<compile_context>
chip_gen: v7x
topology: tpu7x:2x2x1
jax: 0.10.0
libtpu: 0.0.40
codegen_flags: <defaults>
</compile_context>

<pallas_src>
import functools

import jax
import jax.numpy as jnp
from jax.experimental import pallas as pl
from jax.experimental.pallas import tpu as pltpu

BN_EPS = 1e-5
LEAKY_SLOPE = 0.2
H1, H2 = 512, 256  # fixed by the module definition


def _batchnorm_train(h, gamma, beta):
    # PyTorch BatchNorm1d training mode: biased batch variance, eps inside sqrt.
    mean = jnp.mean(h, axis=0, keepdims=True)
    var = jnp.mean((h - mean) ** 2, axis=0, keepdims=True)
    inv = jax.lax.rsqrt(var + BN_EPS)
    return (h - mean) * inv * gamma + beta


def _leaky_relu(x):
    return jnp.where(x >= 0, x, LEAKY_SLOPE * x)


# ----------------------- kernel 1: fc1/fc2 + BN + LeakyReLU -----------------
def _prologue_kernel(z_ref, w1_ref, b1_ref, g1_ref, be1_ref,
                     w2_ref, b2_ref, g2_ref, be2_ref, h2_ref):
    z = z_ref[...]
    h1 = jnp.dot(z, w1_ref[...], preferred_element_type=jnp.float32) + b1_ref[...]
    h1 = _leaky_relu(_batchnorm_train(h1, g1_ref[...], be1_ref[...]))
    h2 = jnp.dot(h1, w2_ref[...], preferred_element_type=jnp.float32) + b2_ref[...]
    h2 = _leaky_relu(_batchnorm_train(h2, g2_ref[...], be2_ref[...]))
    h2_ref[...] = h2.astype(h2_ref.dtype)


# ----------------------- kernel 2: fc3 + tanh, column-tiled -----------------
def _fc3_kernel(h2_ref, w3_ref, b3_ref, out_ref):
    y = jnp.dot(h2_ref[...], w3_ref[...], preferred_element_type=jnp.float32)
    out_ref[...] = jnp.tanh(y + b3_ref[...])


# ------------------------------- sizing helpers -----------------------------
def _round_up(x, m):
    return (x + m - 1) // m * m


def _vmem_capacity_bytes():
    try:
        return int(pltpu.get_tpu_info().vmem_capacity_bytes)
    except Exception:
        return 64 << 20  # conservative: v7x per-TensorCore VMEM


def _pick_fc3_tiling(batch, out_dim, tn_override=None):
    cap = _vmem_capacity_bytes()
    # Double-buffered bytes per output column: W3 tile (bf16) + b3 (f32) + out (f32).
    col_bytes = 2 * (H2 * 2 + 4 + batch * 4)
    if tn_override is None:
        tn = (cap // 8) // col_bytes          # ~1/8 of VMEM for the fc3 tiles
        tn = max(512, min(tn, 16384))
        tn = (tn // 128) * 128
    else:
        assert tn_override % 128 == 0, "tn must be a multiple of 128"
        tn = tn_override
    tn = min(tn, _round_up(out_dim, 128))
    out_dim_p = _round_up(out_dim, tn)        # pad so every grid step is a full tile
    vmem_limit = col_bytes * tn + 2 * batch * H2 * 2 + (4 << 20)
    vmem_limit = int(min(max(vmem_limit, 16 << 20), cap // 2))
    return tn, out_dim_p, vmem_limit


# --------------------------------- forward ----------------------------------
@functools.partial(jax.jit,
                   static_argnames=("input_shape", "tn", "out_dim_p", "vmem_limit"))
def _generator_forward(z, params, input_shape, tn, out_dim_p, vmem_limit):
    B = z.shape[0]
    out_dim = 1
    for d in input_shape:
        out_dim *= d

    vmem = pl.BlockSpec(memory_space=pltpu.MemorySpace.VMEM)

    # ---- fc1 + BN1 + LeakyReLU, fc2 + BN2 + LeakyReLU (full batch, one block) ----
    h2 = pl.pallas_call(
        _prologue_kernel,
        out_shape=jax.ShapeDtypeStruct((B, H2), jnp.bfloat16),
        in_specs=[vmem] * 9,
        out_specs=vmem,
    )(z, params["w1"], params["b1"], params["g1"], params["be1"],
      params["w2"], params["b2"], params["g2"], params["be2"])

    # ---- fc3 + tanh, tiled over output features ----
    w3 = params["w3"].astype(jnp.bfloat16)
    b3 = params["b3"]
    if out_dim_p != out_dim:
        w3 = jnp.pad(w3, ((0, 0), (0, out_dim_p - out_dim)))
        b3 = jnp.pad(b3, ((0, 0), (0, out_dim_p - out_dim)))

    cost = pl.CostEstimate(
        flops=2 * B * H2 * out_dim_p,
        transcendentals=B * out_dim_p,
        bytes_accessed=(H2 * out_dim_p * 2 + out_dim_p * 4
                        + B * H2 * 2 + B * out_dim_p * 4),
    )

    flat = pl.pallas_call(
        _fc3_kernel,
        out_shape=jax.ShapeDtypeStruct((B, out_dim_p), jnp.float32),
        grid=(out_dim_p // tn,),
        in_specs=[
            pl.BlockSpec((B, H2), lambda j: (0, 0)),    # h2: resident across steps
            pl.BlockSpec((H2, tn), lambda j: (0, j)),   # W3: streamed column tiles
            pl.BlockSpec((1, tn), lambda j: (0, j)),    # b3
        ],
        out_specs=pl.BlockSpec((B, tn), lambda j: (0, j)),
        compiler_params=pltpu.CompilerParams(
            dimension_semantics=("parallel",),
            vmem_limit_bytes=vmem_limit,
        ),
        cost_estimate=cost,
    )(h2, w3, b3)

    flat = flat[:, :out_dim]
    return flat.reshape((B,) + tuple(input_shape))


def generator_forward(z, params, input_shape, tn=None):
    out_dim = 1
    for d in input_shape:
        out_dim *= d
    tn_v, out_dim_p, vmem_limit = _pick_fc3_tiling(z.shape[0], out_dim, tn)
    return _generator_forward(z, params, tuple(input_shape), tn_v, out_dim_p, vmem_limit)


# ------------------------------ params & reference --------------------------
def init_params(key, latent_dim, hidden1, hidden2, out_dim):
    """Deterministic init mimicking PyTorch defaults; W3 stored in bf16."""
    ks = jax.random.split(key, 6)

    def lin(kw, kb, fan_in, fan_out):
        bound = 1.0 / jnp.sqrt(fan_in)
        w = jax.random.uniform(kw, (fan_in, fan_out), jnp.float32, -bound, bound)
        b = jax.random.uniform(kb, (1, fan_out), jnp.float32, -bound, bound)
        return w, b

    w1, b1 = lin(ks[0], ks[1], latent_dim, hidden1)
    w2, b2 = lin(ks[2], ks[3], hidden1, hidden2)
    w3, b3 = lin(ks[4], ks[5], hidden2, out_dim)

    return {
        "w1": w1, "b1": b1,
        "g1": jnp.ones((1, hidden1), jnp.float32), "be1": jnp.zeros((1, hidden1), jnp.float32),
        "w2": w2, "b2": b2,
        "g2": jnp.ones((1, hidden2), jnp.float32), "be2": jnp.zeros((1, hidden2), jnp.float32),
        "w3": w3.astype(jnp.bfloat16), "b3": b3,
    }


def reference_forward(z, params, input_shape):
    """Pure-JAX reference with the same numerics (f32 prologue, bf16 fc3)."""
    h = jnp.dot(z, params["w1"], preferred_element_type=jnp.float32) + params["b1"]
    h = _leaky_relu(_batchnorm_train(h, params["g1"], params["be1"]))
    h = jnp.dot(h, params["w2"], preferred_element_type=jnp.float32) + params["b2"]
    h = _leaky_relu(_batchnorm_train(h, params["g2"], params["be2"]))
    h = h.astype(jnp.bfloat16)
    y = jnp.dot(h, params["w3"].astype(jnp.bfloat16),
                preferred_element_type=jnp.float32) + params["b3"]
    y = jnp.tanh(y)
    return y.reshape((z.shape[0],) + tuple(input_shape))


if __name__ == "__main__":
    # Small, module-consistent shapes (real module: n_mels=128, time_steps ~15600).
    latent_dim = 100
    n_mels = 128
    time_steps = 18                              # small stand-in for the huge real value
    input_shape = (1, n_mels, time_steps)        # prod = 2304 (not a multiple of 512)
    batch = 8

    key = jax.random.PRNGKey(0)
    k_z, k_p = jax.random.split(key)

    out_dim = 1 * n_mels * time_steps
    params = init_params(k_p, latent_dim, H1, H2, out_dim)
    z = jax.random.normal(k_z, (batch, latent_dim), jnp.float32)

    # Auto tiling (TN sized from VMEM capacity; single tile at this toy size).
    out_auto = jax.block_until_ready(generator_forward(z, params, input_shape))
    # Forced small tile: exercises the multi-step grid + column-padding path.
    out_tiled = jax.block_until_ready(generator_forward(z, params, input_shape, tn=512))

    ref = jax.block_until_ready(reference_forward(z, params, input_shape))
    assert out_auto.shape == (batch, 1, n_mels, time_steps), out_auto.shape
    assert out_tiled.shape == (batch, 1, n_mels, time_steps), out_tiled.shape
    for out in (out_auto, out_tiled):
        err = float(jnp.max(jnp.abs(out - ref)))
        assert jnp.allclose(out, ref, atol=5e-3, rtol=5e-3), err

    print("KERNEL_OK")
</pallas_src>

<mosaic_0001>
module attributes {stable_mosaic.version = 11 : i64} {
  func.func @_prologue_kernel(%arg0: memref<8x100xf32, #tpu.memory_space<vmem>>, %arg1: memref<100x512xf32, #tpu.memory_space<vmem>>, %arg2: memref<1x512xf32, #tpu.memory_space<vmem>>, %arg3: memref<1x512xf32, #tpu.memory_space<vmem>>, %arg4: memref<1x512xf32, #tpu.memory_space<vmem>>, %arg5: memref<512x256xf32, #tpu.memory_space<vmem>>, %arg6: memref<1x256xf32, #tpu.memory_space<vmem>>, %arg7: memref<1x256xf32, #tpu.memory_space<vmem>>, %arg8: memref<1x256xf32, #tpu.memory_space<vmem>>, %arg9: memref<8x256xbf16, #tpu.memory_space<vmem>>) attributes {dimension_semantics = [], scalar_prefetch = 0 : i64, scratch_operands = 0 : i64, tpu.core_type = #tpu.core_type<tc>} {
    %c0 = arith.constant 0 : index
    %c0_0 = arith.constant 0 : index
    %0 = vector.load %arg0[%c0, %c0_0] : memref<8x100xf32, #tpu.memory_space<vmem>>, vector<8x100xf32>
    %c0_1 = arith.constant 0 : index
    %c0_2 = arith.constant 0 : index
    %1 = vector.load %arg1[%c0_1, %c0_2] : memref<100x512xf32, #tpu.memory_space<vmem>>, vector<100x512xf32>
    %cst = arith.constant dense<0.000000e+00> : vector<8x512xf32>
    %2 = tpu.matmul %0, %1, %cst {dimension_numbers = #tpu.dot_dimension_numbers<[1], [0], [0], [1], [0, 0, 1, 1], [], []>} : vector<8x100xf32>, vector<100x512xf32>, vector<8x512xf32> -> vector<8x512xf32>
    %c0_3 = arith.constant 0 : index
    %c0_4 = arith.constant 0 : index
    %3 = vector.load %arg2[%c0_3, %c0_4] : memref<1x512xf32, #tpu.memory_space<vmem>>, vector<1x512xf32>
    %4 = vector.broadcast %3 : vector<1x512xf32> to vector<8x512xf32>
    %5 = arith.addf %2, %4 : vector<8x512xf32>
    %c0_5 = arith.constant 0 : index
    %c0_6 = arith.constant 0 : index
    %6 = vector.load %arg3[%c0_5, %c0_6] : memref<1x512xf32, #tpu.memory_space<vmem>>, vector<1x512xf32>
    %c0_7 = arith.constant 0 : index
    %c0_8 = arith.constant 0 : index
    %7 = vector.load %arg4[%c0_7, %c0_8] : memref<1x512xf32, #tpu.memory_space<vmem>>, vector<1x512xf32>
    %cst_9 = arith.constant dense<0.000000e+00> : vector<512xf32>
    %8 = vector.multi_reduction <add>, %5, %cst_9 [0] : vector<8x512xf32> to vector<512xf32>
    %9 = vector.shape_cast %8 : vector<512xf32> to vector<1x512xf32>
    %cst_10 = arith.constant 8.000000e+00 : f32
    %10 = vector.broadcast %cst_10 : f32 to vector<1x512xf32>
    %11 = arith.divf %9, %10 : vector<1x512xf32>
    %12 = vector.broadcast %11 : vector<1x512xf32> to vector<8x512xf32>
    %13 = arith.subf %5, %12 : vector<8x512xf32>
    %14 = arith.mulf %13, %13 : vector<8x512xf32>
    %cst_11 = arith.constant dense<0.000000e+00> : vector<512xf32>
    %15 = vector.multi_reduction <add>, %14, %cst_11 [0] : vector<8x512xf32> to vector<512xf32>
    %16 = vector.shape_cast %15 : vector<512xf32> to vector<1x512xf32>
    %cst_12 = arith.constant 8.000000e+00 : f32
    %17 = vector.broadcast %cst_12 : f32 to vector<1x512xf32>
    %18 = arith.divf %16, %17 : vector<1x512xf32>
    %cst_13 = arith.constant 9.99999974E-6 : f32
    %19 = vector.broadcast %cst_13 : f32 to vector<1x512xf32>
    %20 = arith.addf %18, %19 : vector<1x512xf32>
    %21 = math.rsqrt %20 : vector<1x512xf32>
    %22 = vector.broadcast %11 : vector<1x512xf32> to vector<8x512xf32>
    %23 = arith.subf %5, %22 : vector<8x512xf32>
    %24 = vector.broadcast %21 : vector<1x512xf32> to vector<8x512xf32>
    %25 = arith.mulf %23, %24 : vector<8x512xf32>
    %26 = vector.broadcast %6 : vector<1x512xf32> to vector<8x512xf32>
    %27 = arith.mulf %25, %26 : vector<8x512xf32>
    %28 = vector.broadcast %7 : vector<1x512xf32> to vector<8x512xf32>
    %29 = arith.addf %27, %28 : vector<8x512xf32>
    %cst_14 = arith.constant 0.000000e+00 : f32
    %30 = vector.broadcast %cst_14 : f32 to vector<8x512xf32>
    %31 = arith.cmpf oge, %29, %30 : vector<8x512xf32>
    %cst_15 = arith.constant 2.000000e-01 : f32
    %32 = vector.broadcast %cst_15 : f32 to vector<8x512xf32>
    %33 = arith.mulf %32, %29 : vector<8x512xf32>
    %34 = arith.select %31, %29, %33 : vector<8x512xi1>, vector<8x512xf32>
    %c0_16 = arith.constant 0 : index
    %c0_17 = arith.constant 0 : index
    %35 = vector.load %arg5[%c0_16, %c0_17] : memref<512x256xf32, #tpu.memory_space<vmem>>, vector<512x256xf32>
    %cst_18 = arith.constant dense<0.000000e+00> : vector<8x256xf32>
    %36 = tpu.matmul %34, %35, %cst_18 {dimension_numbers = #tpu.dot_dimension_numbers<[1], [0], [0], [1], [0, 0, 1, 1], [], []>} : vector<8x512xf32>, vector<512x256xf32>, vector<8x256xf32> -> vector<8x256xf32>
    %c0_19 = arith.constant 0 : index
    %c0_20 = arith.constant 0 : index
    %37 = vector.load %arg6[%c0_19, %c0_20] : memref<1x256xf32, #tpu.memory_space<vmem>>, vector<1x256xf32>
    %38 = vector.broadcast %37 : vector<1x256xf32> to vector<8x256xf32>
    %39 = arith.addf %36, %38 : vector<8x256xf32>
    %c0_21 = arith.constant 0 : index
    %c0_22 = arith.constant 0 : index
    %40 = vector.load %arg7[%c0_21, %c0_22] : memref<1x256xf32, #tpu.memory_space<vmem>>, vector<1x256xf32>
    %c0_23 = arith.constant 0 : index
    %c0_24 = arith.constant 0 : index
    %41 = vector.load %arg8[%c0_23, %c0_24] : memref<1x256xf32, #tpu.memory_space<vmem>>, vector<1x256xf32>
    %cst_25 = arith.constant dense<0.000000e+00> : vector<256xf32>
    %42 = vector.multi_reduction <add>, %39, %cst_25 [0] : vector<8x256xf32> to vector<256xf32>
    %43 = vector.shape_cast %42 : vector<256xf32> to vector<1x256xf32>
    %cst_26 = arith.constant 8.000000e+00 : f32
    %44 = vector.broadcast %cst_26 : f32 to vector<1x256xf32>
    %45 = arith.divf %43, %44 : vector<1x256xf32>
    %46 = vector.broadcast %45 : vector<1x256xf32> to vector<8x256xf32>
    %47 = arith.subf %39, %46 : vector<8x256xf32>
    %48 = arith.mulf %47, %47 : vector<8x256xf32>
    %cst_27 = arith.constant dense<0.000000e+00> : vector<256xf32>
    %49 = vector.multi_reduction <add>, %48, %cst_27 [0] : vector<8x256xf32> to vector<256xf32>
    %50 = vector.shape_cast %49 : vector<256xf32> to vector<1x256xf32>
    %cst_28 = arith.constant 8.000000e+00 : f32
    %51 = vector.broadcast %cst_28 : f32 to vector<1x256xf32>
    %52 = arith.divf %50, %51 : vector<1x256xf32>
    %cst_29 = arith.constant 9.99999974E-6 : f32
    %53 = vector.broadcast %cst_29 : f32 to vector<1x256xf32>
    %54 = arith.addf %52, %53 : vector<1x256xf32>
    %55 = math.rsqrt %54 : vector<1x256xf32>
    %56 = vector.broadcast %45 : vector<1x256xf32> to vector<8x256xf32>
    %57 = arith.subf %39, %56 : vector<8x256xf32>
    %58 = vector.broadcast %55 : vector<1x256xf32> to vector<8x256xf32>
    %59 = arith.mulf %57, %58 : vector<8x256xf32>
    %60 = vector.broadcast %40 : vector<1x256xf32> to vector<8x256xf32>
    %61 = arith.mulf %59, %60 : vector<8x256xf32>
    %62 = vector.broadcast %41 : vector<1x256xf32> to vector<8x256xf32>
    %63 = arith.addf %61, %62 : vector<8x256xf32>
    %cst_30 = arith.constant 0.000000e+00 : f32
    %64 = vector.broadcast %cst_30 : f32 to vector<8x256xf32>
    %65 = arith.cmpf oge, %63, %64 : vector<8x256xf32>
    %cst_31 = arith.constant 2.000000e-01 : f32
    %66 = vector.broadcast %cst_31 : f32 to vector<8x256xf32>
    %67 = arith.mulf %66, %63 : vector<8x256xf32>
    %68 = arith.select %65, %63, %67 : vector<8x256xi1>, vector<8x256xf32>
    %69 = arith.truncf %68 : vector<8x256xf32> to vector<8x256xbf16>
    %c0_32 = arith.constant 0 : index
    %c0_33 = arith.constant 0 : index
    %70 = vector.load %arg9[%c0_32, %c0_33] : memref<8x256xbf16, #tpu.memory_space<vmem>>, vector<8x256xbf16>
    tpu.vector_store %arg9[%c0_32, %c0_33], %69 {strides = array<i32>} : memref<8x256xbf16, #tpu.memory_space<vmem>>, vector<8x256xbf16>,
    return
  }
}

module attributes {stable_mosaic.version = 11 : i64} {
  func.func @_fc3_kernel(%arg0: i32, %arg1: memref<8x256xbf16, #tpu.memory_space<vmem>>, %arg2: memref<256x2304xbf16, #tpu.memory_space<vmem>>, %arg3: memref<1x2304xf32, #tpu.memory_space<vmem>>, %arg4: memref<8x2304xf32, #tpu.memory_space<vmem>>) attributes {dimension_semantics = [#tpu.dimension_semantics<parallel>], iteration_bounds = array<i64: 1>, scalar_prefetch = 0 : i64, scratch_operands = 0 : i64, tpu.core_type = #tpu.core_type<tc>, window_params = [{pipeline_mode = #tpu.pipeline_mode<synchronous>, transform_indices = @transform_0, window_bounds = array<i64: 8, 256>}, {transform_indices = @transform_1, window_bounds = array<i64: 256, 2304>}, {transform_indices = @transform_2, window_bounds = array<i64: 1, 2304>}, {transform_indices = @transform_3, window_bounds = array<i64: 8, 2304>}]} {
    %c0 = arith.constant 0 : index
    %c0_0 = arith.constant 0 : index
    %0 = vector.load %arg1[%c0, %c0_0] : memref<8x256xbf16, #tpu.memory_space<vmem>>, vector<8x256xbf16>
    %c0_1 = arith.constant 0 : index
    %c0_2 = arith.constant 0 : index
    %1 = vector.load %arg2[%c0_1, %c0_2] : memref<256x2304xbf16, #tpu.memory_space<vmem>>, vector<256x2304xbf16>
    %cst = arith.constant dense<0.000000e+00> : vector<8x2304xf32>
    %2 = tpu.matmul %0, %1, %cst {dimension_numbers = #tpu.dot_dimension_numbers<[1], [0], [0], [1], [0, 0, 1, 1], [], []>} : vector<8x256xbf16>, vector<256x2304xbf16>, vector<8x2304xf32> -> vector<8x2304xf32>
    %c0_3 = arith.constant 0 : index
    %c0_4 = arith.constant 0 : index
    %3 = vector.load %arg3[%c0_3, %c0_4] : memref<1x2304xf32, #tpu.memory_space<vmem>>, vector<1x2304xf32>
    %4 = vector.broadcast %3 : vector<1x2304xf32> to vector<8x2304xf32>
    %5 = arith.addf %2, %4 : vector<8x2304xf32>
    %6 = math.tanh %5 : vector<8x2304xf32>
    %c0_5 = arith.constant 0 : index
    %c0_6 = arith.constant 0 : index
    %7 = vector.load %arg4[%c0_5, %c0_6] : memref<8x2304xf32, #tpu.memory_space<vmem>>, vector<8x2304xf32>
    tpu.vector_store %arg4[%c0_5, %c0_6], %6 {strides = array<i32>} : memref<8x2304xf32, #tpu.memory_space<vmem>>, vector<8x2304xf32>,
    return
  }
  func.func @transform_0(%arg0: i32) -> (i32, i32) {
    %c0_i32 = arith.constant 0 : i32
    %c0_i32_0 = arith.constant 0 : i32
    %c0_i32_1 = arith.constant 0 : i32
    return %c0_i32, %c0_i32_0 : i32, i32
  }
  func.func @transform_1(%arg0: i32) -> (i32, i32) {
    %c0_i32 = arith.constant 0 : i32
    %c0_i32_0 = arith.constant 0 : i32
    return %c0_i32, %arg0 : i32, i32
  }
  func.func @transform_2(%arg0: i32) -> (i32, i32) {
    %c0_i32 = arith.constant 0 : i32
    %c0_i32_0 = arith.constant 0 : i32
    return %c0_i32, %arg0 : i32, i32
  }
  func.func @transform_3(%arg0: i32) -> (i32, i32) {
    %c0_i32 = arith.constant 0 : i32
    %c0_i32_0 = arith.constant 0 : i32
    return %c0_i32, %arg0 : i32, i32
  }
}

</mosaic_0001>

<bundles_post_ra>
// kernel: _generator_forward.2
= control target key start
LH: loop header
LB: loop body
LE: loop exit
PB: predicated region body
PF: predicated region fallthrough
CT: control target
= control target key end

     0   :  { %14 = vsyncpa [#allocation3], 0  ;;  %s1514_s0 = inlined_call_operand.hbm [shape: f32[8,100], index: 0, kind: input, shape index: {}]   ;;  %s1515_s1 = inlined_call_operand.hbm [shape: f32[100,512], index: 1, kind: input, shape index: {}]   ;;  %s1516_s2 = inlined_call_operand.hbm [shape: f32[1,512], index: 2, kind: input, shape index: {}]   ;;  %s1517_s3 = inlined_call_operand.hbm [shape: f32[1,512], index: 3, kind: input, shape index: {}]   ;;  %s1518_s4 = inlined_call_operand.hbm [shape: f32[1,512], index: 4, kind: input, shape index: {}]   ;;  %s1519_s5 = inlined_call_operand.hbm [shape: f32[512,256], index: 5, kind: input, shape index: {}]   ;;  %s1520_s6 = inlined_call_operand.hbm [shape: f32[1,256], index: 6, kind: input, shape index: {}]   ;;  %s1521_s7 = inlined_call_operand.hbm [shape: f32[1,256], index: 7, kind: input, shape index: {}]   ;;  %s1522_s8 = inlined_call_operand.hbm [shape: f32[1,256], index: 8, kind: input, shape index: {}]   ;;  %s1523_s9 = inlined_call_operand.vmem [shape: bf16[8,256], index: 9, kind: output, shape index: {}]  }
   0x1   :  { %15 = vsyncpa [#allocation5], 0 }
   0x2   :  { %16 = vsyncpa [#allocation8], 0 }
   0x3   :  { %17 = vsyncpa [#allocation11], 0 }
   0x4   :  { %18 = vsyncpa [#allocation14], 0  ;;  %s1309_s30 = smov [#allocation4]   ;;  %s1101_s13 = scalar_lea.hbm %s1515_s1, 6656 }
   0x5   :  { %s34_s10 = sshll.u32 %s1309_s30, 4  ;;  %p1102_p0 = scmp.ne.s32.totalorder %s1515_s1, %s1101_s13  ;;  %s35_s10 = int_to_ptr.vmem [resolvable:$true] %s34_s10 }
   0x6   :  { %p1105_p1 = scmp.lt.u32.totalorder %s1101_s13, %s1515_s1 }
   0x8   :  { %p1107_p2 = pnand %p1105_p1, %p1102_p0 }
   0xa   :  { %1110 = shalt.err (!%p1107_p2)
}
   0xb   :  { %s1111_s18 = scalar_lea.vmem %s35_s10, 6656  ;;  %p1116_p4 = scmp.lt.s32.totalorder %s35_s10, %s35_s10 }
   0xc   :  { %p1112_p3 = scmp.ne.s32.totalorder %s35_s10, %s1111_s18  ;;  %p1117_p5 = scmp.lt.s32.totalorder %s1111_s18, %s1111_s18 }
   0xe   :  { %p1118_p6 = por %p1117_p5, %p1116_p4 }
  0x10   :  { %p1119_p7 = pnand %p1118_p6, %p1112_p3 }
  0x12   :  { %1122 = shalt.err (!%p1119_p7)
}
  0x13   :  { %s1310_s19 = smov 512   ;;  %s1311_s20 = smov 32  }
  0x14   :  { %40 = dma.hbm_to_vmem [thread:$0]  %s1515_s1, 6656, %s35_s10, [#allocation5], %s1310_s19, %s1310_s19, %s1311_s20  }
  0x15   :  { %s1312_s23 = smov [#allocation7]   ;;  %s1313_s25 = smov [#allocation10]  }
  0x16   :  { %s57_s24 = sshll.u32 %s1312_s23, 4  ;;  %s76_s26 = sshll.u32 %s1313_s25, 4  ;;  %s58_s24 = int_to_ptr.vmem [resolvable:$true] %s57_s24  ;;  %s77_s26 = int_to_ptr.vmem [resolvable:$true] %s76_s26 }
  0x17   :  { %s1123_s29 = scalar_lea.hbm %s1517_s3, 64 }
  0x18   :  { %p1124_p8 = scmp.ne.s32.totalorder %s1517_s3, %s1123_s29  ;;  %p1127_p9 = scmp.lt.u32.totalorder %s1123_s29, %s1517_s3 }
  0x1a   :  { %p1129_p10 = pnand %p1127_p9, %p1124_p8 }
  0x1c   :  { %1132 = shalt.err (!%p1129_p10)
}
  0x1d   :  { %s1133_s1 = scalar_lea.vmem %s58_s24, 64  ;;  %p1138_p12 = scmp.lt.s32.totalorder %s58_s24, %s58_s24 }
  0x1e   :  { %p1134_p11 = scmp.ne.s32.totalorder %s58_s24, %s1133_s1  ;;  %p1139_p13 = scmp.lt.s32.totalorder %s1133_s1, %s1133_s1 }
  0x20   :  { %p1140_p0 = por %p1139_p13, %p1138_p12 }
  0x22   :  { %p1141_p1 = pnand %p1140_p0, %p1134_p11 }
  0x24   :  { %1144 = shalt.err (!%p1141_p1)
}
  0x25   :  { %60 = dma.hbm_to_vmem [thread:$0]  %s1517_s3, 64, %s58_s24, [#allocation8]  }
  0x26   :  { %s1145_s17 = scalar_lea.hbm %s1519_s5, 16384 }
  0x27   :  { %p1146_p2 = scmp.ne.s32.totalorder %s1519_s5, %s1145_s17  ;;  %p1149_p3 = scmp.lt.u32.totalorder %s1145_s17, %s1519_s5 }
  0x29   :  { %p1151_p4 = pnand %p1149_p3, %p1146_p2 }
  0x2b   :  { %1154 = shalt.err (!%p1151_p4)
}
  0x2c   :  { %s1155_s22 = scalar_lea.vmem %s77_s26, 16384  ;;  %p1160_p6 = scmp.lt.s32.totalorder %s77_s26, %s77_s26 }
  0x2d   :  { %p1156_p5 = scmp.ne.s32.totalorder %s77_s26, %s1155_s22  ;;  %p1161_p7 = scmp.lt.s32.totalorder %s1155_s22, %s1155_s22 }
  0x2f   :  { %p1162_p8 = por %p1161_p7, %p1160_p6 }
  0x31   :  { %p1163_p9 = pnand %p1162_p8, %p1156_p5 }
  0x33   :  { %1166 = shalt.err (!%p1163_p9)
}
  0x34   :  { %s1314_s3 = smov 256   ;;  %s1315_s23 = smov 16  }
  0x35   :  { %82 = dma.hbm_to_vmem [thread:$0]  %s1519_s5, 16384, %s77_s26, [#allocation11], %s1314_s3, %s1314_s3, %s1315_s23  }
  0x36   :  { %s1316_s27 = smov [#allocation13]   ;;  %s1317_s29 = smov [#allocation2]  }
  0x37   :  { %s99_s28 = sshll.u32 %s1316_s27, 4  ;;  %s25_s30 = sshll.u32 %s1317_s29, 4  ;;  %s100_s28 = int_to_ptr.vmem [resolvable:$true] %s99_s28  ;;  %s26_s30 = int_to_ptr.vmem [resolvable:$true] %s25_s30 }
  0x38   :  { %s1167_s13 = scalar_lea.hbm %s1521_s7, 32 }
  0x39   :  { %p1168_p10 = scmp.ne.s32.totalorder %s1521_s7, %s1167_s13  ;;  %p1171_p11 = scmp.lt.u32.totalorder %s1167_s13, %s1521_s7 }
  0x3b   :  { %p1173_p12 = pnand %p1171_p11, %p1168_p10 }
  0x3d   :  { %1176 = shalt.err (!%p1173_p12)
}
  0x3e   :  { %s1177_s5 = scalar_lea.vmem %s100_s28, 32  ;;  %p1182_p0 = scmp.lt.s32.totalorder %s100_s28, %s100_s28 }
  0x3f   :  { %p1178_p13 = scmp.ne.s32.totalorder %s100_s28, %s1177_s5  ;;  %p1183_p1 = scmp.lt.s32.totalorder %s1177_s5, %s1177_s5 }
  0x41   :  { %p1184_p2 = por %p1183_p1, %p1182_p0 }
  0x43   :  { %p1185_p3 = pnand %p1184_p2, %p1178_p13 }
  0x45   :  { %1188 = shalt.err (!%p1185_p3)
}
  0x46   :  { %102 = dma.hbm_to_vmem [thread:$0]  %s1521_s7, 32, %s100_s28, [#allocation14]  }
  0x47   :  { %s1189_s19 = scalar_lea.hbm %s1514_s0, 128 }
  0x48   :  { %p1190_p4 = scmp.ne.s32.totalorder %s1514_s0, %s1189_s19  ;;  %p1193_p5 = scmp.lt.u32.totalorder %s1189_s19, %s1514_s0 }
  0x4a   :  { %p1195_p6 = pnand %p1193_p5, %p1190_p4 }
  0x4c   :  { %1198 = shalt.err (!%p1195_p6)
}
  0x4d   :  { %s1199_s23 = scalar_lea.vmem %s26_s30, 128  ;;  %p1204_p8 = scmp.lt.s32.totalorder %s26_s30, %s26_s30 }
  0x4e   :  { %p1200_p7 = scmp.ne.s32.totalorder %s26_s30, %s1199_s23  ;;  %p1205_p9 = scmp.lt.s32.totalorder %s1199_s23, %s1199_s23 }
  0x50   :  { %p1206_p10 = por %p1205_p9, %p1204_p8 }
  0x52   :  { %p1207_p11 = pnand %p1206_p10, %p1200_p7 }
  0x54   :  { %1210 = shalt.err (!%p1207_p11)
}
  0x55   :  { %28 = dma.hbm_to_vmem [thread:$0]  %s1514_s0, 128, %s26_s30, [#allocation3]  }
  0x56   :  { %s1318_s25 = smov [#allocation6]   ;;  %s1319_s28 = smov [#allocation9]  }
  0x57   :  { %s47_s27 = sshll.u32 %s1318_s25, 4  ;;  %s67_s29 = sshll.u32 %s1319_s28, 4  ;;  %s48_s27 = int_to_ptr.vmem [resolvable:$true] %s47_s27  ;;  %s68_s29 = int_to_ptr.vmem [resolvable:$true] %s67_s29 }
  0x58   :  { %s1211_s13 = scalar_lea.hbm %s1516_s2, 64 }
  0x59   :  { %p1212_p12 = scmp.ne.s32.totalorder %s1516_s2, %s1211_s13  ;;  %p1215_p13 = scmp.lt.u32.totalorder %s1211_s13, %s1516_s2 }
  0x5b   :  { %p1217_p0 = pnand %p1215_p13, %p1212_p12 }
  0x5d   :  { %1220 = shalt.err (!%p1217_p0)
}
  0x5e   :  { %s1221_s0 = scalar_lea.vmem %s48_s27, 64  ;;  %p1226_p2 = scmp.lt.s32.totalorder %s48_s27, %s48_s27 }
  0x5f   :  { %p1222_p1 = scmp.ne.s32.totalorder %s48_s27, %s1221_s0  ;;  %p1227_p3 = scmp.lt.s32.totalorder %s1221_s0, %s1221_s0 }
  0x61   :  { %p1228_p4 = por %p1227_p3, %p1226_p2 }
  0x63   :  { %p1229_p5 = pnand %p1228_p4, %p1222_p1 }
  0x65   :  { %1232 = shalt.err (!%p1229_p5)
}
  0x66   :  { %50 = dma.hbm_to_vmem [thread:$0]  %s1516_s2, 64, %s48_s27, [#allocation5]  }
  0x67   :  { %s1233_s17 = scalar_lea.hbm %s1518_s4, 64 }
  0x68   :  { %p1234_p6 = scmp.ne.s32.totalorder %s1518_s4, %s1233_s17  ;;  %p1237_p7 = scmp.lt.u32.totalorder %s1233_s17, %s1518_s4 }
  0x6a   :  { %p1239_p8 = pnand %p1237_p7, %p1234_p6 }
  0x6c   :  { %1242 = shalt.err (!%p1239_p8)
}
  0x6d   :  { %s1243_s22 = scalar_lea.vmem %s68_s29, 64  ;;  %p1248_p10 = scmp.lt.s32.totalorder %s68_s29, %s68_s29 }
  0x6e   :  { %p1244_p9 = scmp.ne.s32.totalorder %s68_s29, %s1243_s22  ;;  %p1249_p11 = scmp.lt.s32.totalorder %s1243_s22, %s1243_s22 }
  0x70   :  { %p1250_p12 = por %p1249_p11, %p1248_p10 }
  0x72   :  { %p1251_p13 = pnand %p1250_p12, %p1244_p9 }
  0x74   :  { %1254 = shalt.err (!%p1251_p13)
}
  0x75   :  { %70 = dma.hbm_to_vmem [thread:$0]  %s1518_s4, 64, %s68_s29, [#allocation8]  }
  0x76   :  { %s1320_s23 = smov [#allocation12]   ;;  %s1321_s24 = smov [#allocation15]  }
  0x77   :  { %s89_s7 = sshll.u32 %s1320_s23, 4  ;;  %s109_s25 = sshll.u32 %s1321_s24, 4  ;;  %s90_s7 = int_to_ptr.vmem [resolvable:$true] %s89_s7  ;;  %s110_s25 = int_to_ptr.vmem [resolvable:$true] %s109_s25 }
  0x78   :  { %s1255_s11 = scalar_lea.hbm %s1520_s6, 32 }
  0x79   :  { %p1256_p0 = scmp.ne.s32.totalorder %s1520_s6, %s1255_s11  ;;  %p1259_p1 = scmp.lt.u32.totalorder %s1255_s11, %s1520_s6 }
  0x7b   :  { %p1261_p2 = pnand %p1259_p1, %p1256_p0 }
  0x7d   :  { %1264 = shalt.err (!%p1261_p2)
}
  0x7e   :  { %s1265_s4 = scalar_lea.vmem %s90_s7, 32  ;;  %p1270_p4 = scmp.lt.s32.totalorder %s90_s7, %s90_s7 }
  0x7f   :  { %p1266_p3 = scmp.ne.s32.totalorder %s90_s7, %s1265_s4  ;;  %p1271_p5 = scmp.lt.s32.totalorder %s1265_s4, %s1265_s4 }
  0x81   :  { %p1272_p6 = por %p1271_p5, %p1270_p4 }
  0x83   :  { %p1273_p7 = pnand %p1272_p6, %p1266_p3 }
  0x85   :  { %1276 = shalt.err (!%p1273_p7)
}
  0x86   :  { %92 = dma.hbm_to_vmem [thread:$0]  %s1520_s6, 32, %s90_s7, [#allocation11]  }
  0x87   :  { %s1277_s30 = scalar_lea.hbm %s1522_s8, 32 }
  0x88   :  { %p1278_p8 = scmp.ne.s32.totalorder %s1522_s8, %s1277_s30  ;;  %p1281_p9 = scmp.lt.u32.totalorder %s1277_s30, %s1522_s8 }
  0x8a   :  { %p1283_p10 = pnand %p1281_p9, %p1278_p8 }
  0x8c   :  { %1286 = shalt.err (!%p1283_p10)
}
  0x8d   :  { %s1287_s18 = scalar_lea.vmem %s110_s25, 32  ;;  %p1292_p12 = scmp.lt.s32.totalorder %s110_s25, %s110_s25 }
  0x8e   :  { %p1288_p11 = scmp.ne.s32.totalorder %s110_s25, %s1287_s18  ;;  %p1293_p13 = scmp.lt.s32.totalorder %s1287_s18, %s1287_s18 }
  0x90   :  { %p1294_p0 = por %p1293_p13, %p1292_p12 }
  0x92   :  { %p1295_p1 = pnand %p1294_p0, %p1288_p11 }
  0x94   :  { %1298 = shalt.err (!%p1295_p1)
}
  0x95   :  { %112 = dma.hbm_to_vmem [thread:$0]  %s1522_s8, 32, %s110_s25, [#allocation14]  }
  0x96   :  { %1299 = dma.done.wait [#allocation3], 128  }
  0x97   :  { %1300 = vsyncadd [#allocation3], 4294967168 }
  0x98   :  { %1301 = dma.done.wait [#allocation5], 6720  }
  0x99   :  { %1302 = vsyncadd [#allocation5], 4294960576 }
  0x9a   :  { %1303 = dma.done.wait [#allocation8], 128  }
  0x9b   :  { %1304 = vsyncadd [#allocation8], 4294967168 }
  0x9c   :  { %1305 = dma.done.wait [#allocation11], 16416  }
  0x9d   :  { %1306 = vsyncadd [#allocation11], 4294950880 }
  0x9e   :  { %1307 = dma.done.wait [#allocation14], 64  }
  0x9f   :  { %1308 = vsyncadd [#allocation14], 4294967232  ;;  %v1322_v0 = vmov 0.0   ;;  %v142_v1 = vld [vmem:[#allocation4 + $0x8] sm:$0xff]  ;;  %v144_v3 = vld [vmem:[#allocation4 + $0x18] sm:$0xff]  ;;  %vm219_vm0 = vcmask 1043456  }
  0xa0   :  { %296 = vmatprep.mubr.f32.mxu0 %v1322_v0  ;;  %367 = vmatprep.mubr.f32.mxu1 %v1322_v0  ;;  %v146_v2 = vld [vmem:[#allocation4 + $0x28] sm:$0xff]  ;;  %v148_v5 = vld [vmem:[#allocation4 + $0x38] sm:$0xff]  ;;  %v141_v6 = vld [vmem:[#allocation4] sm:$0xff]  ;;  %vm215_vm1 = vcmask 818176  }
  0xa1   :  { %v895_v4 = vpack.c.bf16 %v146_v2, %v142_v1  ;;  %v145_v7 = vld [vmem:[#allocation4 + $0x20] sm:$0xff]  ;;  %v919_v8 = vpack.c.bf16 %v148_v5, %v144_v3  ;;  %v143_v10 = vld [vmem:[#allocation4 + $0x10] sm:$0xff]  ;;  %v150_v12 = vld [vmem:[#allocation4 + $0x48] sm:$0xff] }
  0xa2   :  { %v897_v9 = vpack.c.bf16 %v145_v7, %v141_v6  ;;  %v147_v11 = vld [vmem:[#allocation4 + $0x30] sm:$0xff]  ;;  %v154_v14 = vld [vmem:[#allocation4 + $0x68] sm:$0xff]  ;;  %v152_v15 = vld [vmem:[#allocation4 + $0x58] sm:$0xff] }
  0xa3   :  { %896 = vmatprep.subr.bf16.mxu0 %v895_v4  ;;  %v921_v13 = vpack.c.bf16 %v147_v11, %v143_v10  ;;  %v156_v16 = vld [vmem:[#allocation4 + $0x78] sm:$0xff]  ;;  %920 = vmatprep.subr.bf16.mxu1 %v919_v8  ;;  %v899_v17 = vpack.c.bf16 %v154_v14, %v150_v12  ;;  %v149_v19 = vld [vmem:[#allocation4 + $0x40] sm:$0xff]  ;;  %v151_v21 = vld [vmem:[#allocation4 + $0x50] sm:$0xff] }
  0xa4   :  { %898 = vmatpush1.bf16.msra.mxu0 %v897_v9  ;;  %v923_v18 = vpack.c.bf16 %v156_v16, %v152_v15  ;;  %v153_v20 = vld [vmem:[#allocation4 + $0x60] sm:$0xff]  ;;  %v155_v23 = vld [vmem:[#allocation4 + $0x70] sm:$0xff]  ;;  %v158_v24 = vld [vmem:[#allocation4 + $0x88] sm:$0xff] }
  0xa5   :  { %922 = vmatpush1.bf16.msra.mxu1 %v921_v13  ;;  %v901_v22 = vpack.c.bf16 %v153_v20, %v149_v19  ;;  %v162_v25 = vld [vmem:[#allocation4 + $0xa8] sm:$0xff]  ;;  %900 = vmatprep.subr.bf16.mxu0 %v899_v17  ;;  %v925_v26 = vpack.c.bf16 %v155_v23, %v151_v21  ;;  %v160_v28 = vld [vmem:[#allocation4 + $0x98] sm:$0xff]  ;;  %v157_v30 = vld [vmem:[#allocation4 + $0x80] sm:$0xff] }
  0xa6   :  { %924 = vmatprep.subr.bf16.mxu1 %v923_v18  ;;  %v903_v27 = vpack.c.bf16 %v162_v25, %v158_v24  ;;  %v164_v29 = vld [vmem:[#allocation4 + $0xb8] sm:$0xff]  ;;  %v161_v32 = vld [vmem:[#allocation4 + $0xa0] sm:$0xff]  ;;  %v159_v33 = vld [vmem:[#allocation4 + $0x90] sm:$0xff] }
  0xa7   :  { %v927_v31 = vpack.c.bf16 %v164_v29, %v160_v28  ;;  %v163_v34 = vld [vmem:[#allocation4 + $0xb0] sm:$0xff]  ;;  %v905_v35 = vpack.c.bf16 %v161_v32, %v157_v30  ;;  %v166_v36 = vld [vmem:[#allocation4 + $0xc8] sm:$0xff]  ;;  %v168_v38 = vld [vmem:[#allocation4 + $0xd8] sm:$0xff] }
  0xa8   :  { %902 = vmatpush1.bf16.msra.mxu0 %v901_v22  ;;  %v170_v37 = vld [vmem:[#allocation4 + $0xe8] sm:$0xff]  ;;  %v929_v39 = vpack.c.bf16 %v163_v34, %v159_v33  ;;  %v172_v41 = vld [vmem:[#allocation4 + $0xf8] sm:$0xff]  ;;  %v165_v42 = vld [vmem:[#allocation4 + $0xc0] sm:$0xff] }
  0xa9   :  { %926 = vmatpush1.bf16.msra.mxu1 %v925_v26  ;;  %904 = vmatprep.subr.bf16.mxu0 %v903_v27  ;;  %v907_v40 = vpack.c.bf16 %v170_v37, %v166_v36  ;;  %v169_v43 = vld [vmem:[#allocation4 + $0xe0] sm:$0xff]  ;;  %v931_v44 = vpack.c.bf16 %v172_v41, %v168_v38  ;;  %v167_v45 = vld [vmem:[#allocation4 + $0xd0] sm:$0xff]  ;;  %v174_v47 = vld [vmem:[#allocation4 + $0x108] sm:$0xff] }
  0xaa   :  { %928 = vmatprep.subr.bf16.mxu1 %v927_v31  ;;  %v171_v46 = vld [vmem:[#allocation4 + $0xf0] sm:$0xff]  ;;  %v178_v48 = vld [vmem:[#allocation4 + $0x128] sm:$0xff]  ;;  %v176_v49 = vld [vmem:[#allocation4 + $0x118] sm:$0xff]  ;;  %v909_v51 = vpack.c.bf16 %v169_v43, %v165_v42 }
  0xab   :  { %v180_v50 = vld [vmem:[#allocation4 + $0x138] sm:$0xff]  ;;  %v933_v52 = vpack.c.bf16 %v171_v46, %v167_v45  ;;  %v911_v53 = vpack.c.bf16 %v178_v48, %v174_v47  ;;  %v173_v54 = vld [vmem:[#allocation4 + $0x100] sm:$0xff]  ;;  %v175_v56 = vld [vmem:[#allocation4 + $0x110] sm:$0xff] }
  0xac   :  { %906 = vmatpush1.bf16.msra.mxu0 %v905_v35  ;;  %v177_v55 = vld [vmem:[#allocation4 + $0x120] sm:$0xff]  ;;  %v935_v57 = vpack.c.bf16 %v180_v50, %v176_v49  ;;  %v179_v58 = vld [vmem:[#allocation4 + $0x130] sm:$0xff]  ;;  %v182_v59 = vld [vmem:[#allocation4 + $0x148] sm:$0xff] }
  0xad   :  { %930 = vmatpush1.bf16.msra.mxu1 %v929_v39  ;;  %908 = vmatprep.subr.bf16.mxu0 %v907_v40  ;;  %v186_v60 = vld [vmem:[#allocation4 + $0x168] sm:$0xff]  ;;  %v184_v61 = vld [vmem:[#allocation4 + $0x158] sm:$0xff]  ;;  %v913_v63 = vpack.c.bf16 %v177_v55, %v173_v54  ;;  %v937_v0 = vpack.c.bf16 %v179_v58, %v175_v56  ;;  %v181_v2 = vld [vmem:[#allocation4 + $0x140] sm:$0xff] }
  0xae   :  { %932 = vmatprep.subr.bf16.mxu1 %v931_v44  ;;  %v188_v62 = vld [vmem:[#allocation4 + $0x178] sm:$0xff]  ;;  %v915_v1 = vpack.c.bf16 %v186_v60, %v182_v59  ;;  %v185_v3 = vld [vmem:[#allocation4 + $0x160] sm:$0xff]  ;;  %v183_v5 = vld [vmem:[#allocation4 + $0x150] sm:$0xff] }
  0xaf   :  { %v939_v4 = vpack.c.bf16 %v188_v62, %v184_v61  ;;  %v187_v6 = vld [vmem:[#allocation4 + $0x170] sm:$0xff]  ;;  %v917_v7 = vpack.c.bf16 %v185_v3, %v181_v2  ;;  %v190_v9 = vld [vmem:[#allocation4 + $0x188] sm:$0xf]  ;;  %v192_v10 = vld [vmem:[#allocation4 + $0x198] sm:$0xf] }
  0xb0   :  { %910 = vmatpush1.bf16.msra.mxu0 %v909_v51  ;;  %v941_v8 = vpack.c.bf16 %v187_v6, %v183_v5  ;;  %v516_v11 = vld [vmem:[#allocation10 + $0x8] sm:$0xff]  ;;  %v189_v12 = vld [vmem:[#allocation4 + $0x180] sm:$0xf]  ;;  %v518_v13 = vld [vmem:[#allocation10 + $0x18] sm:$0xff] }
  0xb1   :  { %934 = vmatpush1.bf16.msra.mxu1 %v933_v52  ;;  %912 = vmatprep.subr.bf16.mxu0 %v911_v53  ;;  %v580_v14 = vld [vmem:[#allocation10 + $0x208] sm:$0xff]  ;;  %v582_v15 = vld [vmem:[#allocation10 + $0x218] sm:$0xff]  ;;  %v191_v16 = vld [vmem:[#allocation4 + $0x190] sm:$0xf]  ;;  %v943_v24 = vpack.c.bf16 %v518_v13, %v516_v11 }
  0xb2   :  { %936 = vmatprep.subr.bf16.mxu1 %v935_v57  ;;  %v515_v17 = vld [vmem:[#allocation10] sm:$0xff]  ;;  %v517_v18 = vld [vmem:[#allocation10 + $0x10] sm:$0xff]  ;;  %v520_v21 = vld [vmem:[#allocation10 + $0x28] sm:$0xff]  ;;  %v1007_v27 = vpack.c.bf16 %v582_v15, %v580_v14 }
  0xb3   :  { %v579_v19 = vld [vmem:[#allocation10 + $0x200] sm:$0xff]  ;;  %v581_v20 = vld [vmem:[#allocation10 + $0x210] sm:$0xff]  ;;  %v522_v22 = vld [vmem:[#allocation10 + $0x38] sm:$0xff]  ;;  %v945_v28 = vpack.c.bf16 %v517_v18, %v515_v17 }
  0xb4   :  { %914 = vmatpush1.bf16.msra.mxu0 %v913_v63  ;;  %v140_v23 = vld [vmem:[#allocation2] sm:$0xff]  ;;  %v586_v26 = vld [vmem:[#allocation10 + $0x238] sm:$0xff]  ;;  %v1009_v29 = vpack.c.bf16 %v581_v20, %v579_v19  ;;  %v947_v30 = vpack.c.bf16 %v522_v22, %v520_v21  ;;  %v519_v32 = vld [vmem:[#allocation10 + $0x20] sm:$0xff] }
  0xb5   :  { %938 = vmatpush1.bf16.msra.mxu1 %v937_v0  ;;  %916 = vmatprep.subr.bf16.mxu0 %v915_v1  ;;  %v584_v25 = vld [vmem:[#allocation10 + $0x228] sm:$0xff]  ;;  %v521_v33 = vld [vmem:[#allocation10 + $0x30] sm:$0xff]  ;;  %v583_v34 = vld [vmem:[#allocation10 + $0x220] sm:$0xff] }
  0xb6   :  { %940 = vmatprep.subr.bf16.mxu1 %v939_v4  ;;  %v1011_v31 = vpack.c.bf16 %v586_v26, %v584_v25  ;;  %v949_v35 = vpack.c.bf16 %v521_v33, %v519_v32  ;;  %v585_v36 = vld [vmem:[#allocation10 + $0x230] sm:$0xff]  ;;  %v524_v38 = vld [vmem:[#allocation10 + $0x48] sm:$0xff]  ;;  %v526_v39 = vld [vmem:[#allocation10 + $0x58] sm:$0xff] }
  0xb7   :  { %v1013_v37 = vpack.c.bf16 %v585_v36, %v583_v34  ;;  %v588_v40 = vld [vmem:[#allocation10 + $0x248] sm:$0xff]  ;;  %v951_v41 = vpack.c.bf16 %v526_v39, %v524_v38  ;;  %v590_v42 = vld [vmem:[#allocation10 + $0x258] sm:$0xff]  ;;  %v523_v43 = vld [vmem:[#allocation10 + $0x40] sm:$0xff] }
  0xb8   :  { %918 = vmatpush1.bf16.msra.mxu0 %v917_v7  ;;  %v525_v44 = vld [vmem:[#allocation10 + $0x50] sm:$0xff]  ;;  %v1015_v45 = vpack.c.bf16 %v590_v42, %v588_v40  ;;  %v587_v47 = vld [vmem:[#allocation10 + $0x240] sm:$0xff]  ;;  %v528_v50 = vld [vmem:[#allocation10 + $0x68] sm:$0xff] }
  0xb9   :  { %942 = vmatpush1.bf16.msra.mxu1 %v941_v8  ;;  %887 = vmatprep.subr.msk.mxu0 %vm219_vm0, %v190_v9  ;;  %v953_v46 = vpack.c.bf16 %v525_v44, %v523_v43  ;;  %v589_v48 = vld [vmem:[#allocation10 + $0x250] sm:$0xff]  ;;  %v530_v51 = vld [vmem:[#allocation10 + $0x78] sm:$0xff]  ;;  %v592_v52 = vld [vmem:[#allocation10 + $0x268] sm:$0xff] }
  0xba   :  { %890 = vmatprep.subr.msk.mxu1 %vm219_vm0, %v192_v10  ;;  %v1017_v49 = vpack.c.bf16 %v589_v48, %v587_v47  ;;  %v955_v53 = vpack.c.bf16 %v530_v51, %v528_v50  ;;  %v594_v54 = vld [vmem:[#allocation10 + $0x278] sm:$0xff]  ;;  %v527_v55 = vld [vmem:[#allocation10 + $0x60] sm:$0xff]  ;;  %v529_v56 = vld [vmem:[#allocation10 + $0x70] sm:$0xff] }
  0xbb   :  { %v1019_v57 = vpack.c.bf16 %v594_v54, %v592_v52  ;;  %v957_v58 = vpack.c.bf16 %v529_v56, %v527_v55  ;;  %v591_v59 = vld [vmem:[#allocation10 + $0x260] sm:$0xff]  ;;  %v593_v60 = vld [vmem:[#allocation10 + $0x270] sm:$0xff]  ;;  %v532_v62 = vld [vmem:[#allocation10 + $0x88] sm:$0xff] }
  0xbc   :  { %888 = vmatpush1.msk.msra.mxu0 %vm219_vm0, %v189_v12  ;;  %v1021_v61 = vpack.c.bf16 %v593_v60, %v591_v59  ;;  %v534_v63 = vld [vmem:[#allocation10 + $0x98] sm:$0xff]  ;;  %v596_v0 = vld [vmem:[#allocation10 + $0x288] sm:$0xff]  ;;  %v531_v3 = vld [vmem:[#allocation10 + $0x80] sm:$0xff] }
  0xbd   :  { %891 = vmatpush1.msk.msra.mxu1 %vm219_vm0, %v191_v16  ;;  %889 = vmatmul.mubr.msk.f32.vlgmr.msra.gmra.mrb[0].mxu0 %vm215_vm1, %v140_v23  ;;  %v959_v1 = vpack.c.bf16 %v534_v63, %v532_v62  ;;  %v598_v2 = vld [vmem:[#allocation10 + $0x298] sm:$0xff]  ;;  %v533_v4 = vld [vmem:[#allocation10 + $0x90] sm:$0xff]  ;;  %v595_v7 = vld [vmem:[#allocation10 + $0x280] sm:$0xff] }
  0xbe   :  { %892 = vmatmul.mubr.msk.f32.vlgmr.msra.gmra.mrb[0].mxu1 %vm215_vm1, %v140_v23  ;;  %944 = vmatprep.subr.bf16.mxu1 %v943_v24  ;;  %v1023_v5 = vpack.c.bf16 %v598_v2, %v596_v0  ;;  %v961_v6 = vpack.c.bf16 %v533_v4, %v531_v3  ;;  %v597_v8 = vld [vmem:[#allocation10 + $0x290] sm:$0xff]  ;;  %v536_v10 = vld [vmem:[#allocation10 + $0xa8] sm:$0xff]  ;;  %v538_v11 = vld [vmem:[#allocation10 + $0xb8] sm:$0xff] }
  0xbf   :  { %1008 = vmatprep.subr.bf16.mxu0 %v1007_v27  ;;  %946 = vmatpush1.bf16.msra.mxu1 %v945_v28  ;;  %v1025_v9 = vpack.c.bf16 %v597_v8, %v595_v7  ;;  %v600_v12 = vld [vmem:[#allocation10 + $0x2a8] sm:$0xff]  ;;  %v963_v13 = vpack.c.bf16 %v538_v11, %v536_v10  ;;  %v602_v14 = vld [vmem:[#allocation10 + $0x2b8] sm:$0xff]  ;;  %v535_v15 = vld [vmem:[#allocation10 + $0xa0] sm:$0xff] }
  0xc0   :  { %1010 = vmatpush1.bf16.msra.mxu0 %v1009_v29  ;;  %948 = vmatprep.subr.bf16.mxu1 %v947_v30  ;;  %v537_v16 = vld [vmem:[#allocation10 + $0xb0] sm:$0xff]  ;;  %v1027_v17 = vpack.c.bf16 %v602_v14, %v600_v12  ;;  %v599_v19 = vld [vmem:[#allocation10 + $0x2a0] sm:$0xff]  ;;  %v540_v22 = vld [vmem:[#allocation10 + $0xc8] sm:$0xff] }
  0xc1   :  { %1012 = vmatprep.subr.bf16.mxu0 %v1011_v31  ;;  %v965_v18 = vpack.c.bf16 %v537_v16, %v535_v15  ;;  %v601_v20 = vld [vmem:[#allocation10 + $0x2b0] sm:$0xff]  ;;  %v542_v23 = vld [vmem:[#allocation10 + $0xd8] sm:$0xff]  ;;  %v604_v24 = vld [vmem:[#allocation10 + $0x2c8] sm:$0xff] }
  0xc2   :  { %v1029_v21 = vpack.c.bf16 %v601_v20, %v599_v19  ;;  %v967_v25 = vpack.c.bf16 %v542_v23, %v540_v22  ;;  %v606_v26 = vld [vmem:[#allocation10 + $0x2d8] sm:$0xff]  ;;  %v539_v27 = vld [vmem:[#allocation10 + $0xc0] sm:$0xff]  ;;  %v541_v28 = vld [vmem:[#allocation10 + $0xd0] sm:$0xff] }
  0xc3   :  { %950 = vmatpush1.bf16.msra.mxu1 %v949_v35  ;;  %v1031_v29 = vpack.c.bf16 %v606_v26, %v604_v24  ;;  %v969_v30 = vpack.c.bf16 %v541_v28, %v539_v27  ;;  %v603_v31 = vld [vmem:[#allocation10 + $0x2c0] sm:$0xff]  ;;  %v605_v32 = vld [vmem:[#allocation10 + $0x2d0] sm:$0xff]  ;;  %v544_v34 = vld [vmem:[#allocation10 + $0xe8] sm:$0xff] }
  0xc4   :  { %1014 = vmatpush1.bf16.msra.mxu0 %v1013_v37  ;;  %952 = vmatprep.subr.bf16.mxu1 %v951_v41  ;;  %v1033_v33 = vpack.c.bf16 %v605_v32, %v603_v31  ;;  %v546_v35 = vld [vmem:[#allocation10 + $0xf8] sm:$0xff]  ;;  %v608_v36 = vld [vmem:[#allocation10 + $0x2e8] sm:$0xff]  ;;  %v543_v39 = vld [vmem:[#allocation10 + $0xe0] sm:$0xff] }
  0xc5   :  { %1016 = vmatprep.subr.bf16.mxu0 %v1015_v45  ;;  %v971_v37 = vpack.c.bf16 %v546_v35, %v544_v34  ;;  %v610_v38 = vld [vmem:[#allocation10 + $0x2f8] sm:$0xff]  ;;  %v545_v40 = vld [vmem:[#allocation10 + $0xf0] sm:$0xff]  ;;  %v607_v43 = vld [vmem:[#allocation10 + $0x2e0] sm:$0xff] }
  0xc6   :  { %v1035_v41 = vpack.c.bf16 %v610_v38, %v608_v36  ;;  %v973_v42 = vpack.c.bf16 %v545_v40, %v543_v39  ;;  %v609_v44 = vld [vmem:[#allocation10 + $0x2f0] sm:$0xff]  ;;  %v550_v47 = vld [vmem:[#allocation10 + $0x118] sm:$0xff]  ;;  %v612_v48 = vld [vmem:[#allocation10 + $0x308] sm:$0xff] }
  0xc7   :  { %954 = vmatpush1.bf16.msra.mxu1 %v953_v46  ;;  %v1037_v45 = vpack.c.bf16 %v609_v44, %v607_v43  ;;  %v548_v46 = vld [vmem:[#allocation10 + $0x108] sm:$0xff]  ;;  %v614_v50 = vld [vmem:[#allocation10 + $0x318] sm:$0xff]  ;;  %v547_v51 = vld [vmem:[#allocation10 + $0x100] sm:$0xff] }
  0xc8   :  { %1018 = vmatpush1.bf16.msra.mxu0 %v1017_v49  ;;  %956 = vmatprep.subr.bf16.mxu1 %v955_v53  ;;  %v975_v49 = vpack.c.bf16 %v550_v47, %v548_v46  ;;  %v549_v52 = vld [vmem:[#allocation10 + $0x110] sm:$0xff]  ;;  %v1039_v53 = vpack.c.bf16 %v614_v50, %v612_v48  ;;  %v611_v55 = vld [vmem:[#allocation10 + $0x300] sm:$0xff]  ;;  %v554_v59 = vld [vmem:[#allocation10 + $0x138] sm:$0xff] }
  0xc9   :  { %1020 = vmatprep.subr.bf16.mxu0 %v1019_v57  ;;  %v977_v54 = vpack.c.bf16 %v549_v52, %v547_v51  ;;  %v613_v56 = vld [vmem:[#allocation10 + $0x310] sm:$0xff]  ;;  %v616_v60 = vld [vmem:[#allocation10 + $0x328] sm:$0xff]  ;;  %v618_v62 = vld [vmem:[#allocation10 + $0x338] sm:$0xff] }
  0xca   :  { %v1041_v57 = vpack.c.bf16 %v613_v56, %v611_v55  ;;  %v551_v63 = vld [vmem:[#allocation10 + $0x120] sm:$0xff]  ;;  %v553_v0 = vld [vmem:[#allocation10 + $0x130] sm:$0xff]  ;;  %v558_v7 = vld [vmem:[#allocation10 + $0x158] sm:$0xff] }
  0xcb   :  { %958 = vmatpush1.bf16.msra.mxu1 %v957_v58  ;;  %v552_v58 = vld [vmem:[#allocation10 + $0x128] sm:$0xff]  ;;  %v981_v2 = vpack.c.bf16 %v553_v0, %v551_v63  ;;  %v615_v3 = vld [vmem:[#allocation10 + $0x320] sm:$0xff]  ;;  %v617_v4 = vld [vmem:[#allocation10 + $0x330] sm:$0xff] }
  0xcc   :  { %1022 = vmatpush1.bf16.msra.mxu0 %v1021_v61  ;;  %960 = vmatprep.subr.bf16.mxu1 %v959_v1  ;;  %v979_v61 = vpack.c.bf16 %v554_v59, %v552_v58  ;;  %v1043_v1 = vpack.c.bf16 %v618_v62, %v616_v60  ;;  %v620_v8 = vld [vmem:[#allocation10 + $0x348] sm:$0xff]  ;;  %v622_v10 = vld [vmem:[#allocation10 + $0x358] sm:$0xff]  ;;  %v555_v11 = vld [vmem:[#allocation10 + $0x140] sm:$0xff] }
  0xcd   :  { %1024 = vmatprep.subr.bf16.mxu0 %v1023_v5  ;;  %v1045_v5 = vpack.c.bf16 %v617_v4, %v615_v3  ;;  %v557_v12 = vld [vmem:[#allocation10 + $0x150] sm:$0xff]  ;;  %v619_v15 = vld [vmem:[#allocation10 + $0x340] sm:$0xff]  ;;  %v562_v19 = vld [vmem:[#allocation10 + $0x178] sm:$0xff] }
  0xce   :  { %v985_v14 = vpack.c.bf16 %v557_v12, %v555_v11  ;;  %v621_v16 = vld [vmem:[#allocation10 + $0x350] sm:$0xff]  ;;  %v624_v20 = vld [vmem:[#allocation10 + $0x368] sm:$0xff]  ;;  %v626_v22 = vld [vmem:[#allocation10 + $0x378] sm:$0xff] }
  0xcf   :  { %962 = vmatpush1.bf16.msra.mxu1 %v961_v6  ;;  %v556_v6 = vld [vmem:[#allocation10 + $0x148] sm:$0xff]  ;;  %v559_v23 = vld [vmem:[#allocation10 + $0x160] sm:$0xff]  ;;  %v561_v24 = vld [vmem:[#allocation10 + $0x170] sm:$0xff] }
  0xd0   :  { %1026 = vmatpush1.bf16.msra.mxu0 %v1025_v9  ;;  %964 = vmatprep.subr.bf16.mxu1 %v963_v13  ;;  %v983_v9 = vpack.c.bf16 %v558_v7, %v556_v6  ;;  %v1047_v13 = vpack.c.bf16 %v622_v10, %v620_v8  ;;  %v989_v26 = vpack.c.bf16 %v561_v24, %v559_v23  ;;  %v623_v27 = vld [vmem:[#allocation10 + $0x360] sm:$0xff]  ;;  %v625_v28 = vld [vmem:[#allocation10 + $0x370] sm:$0xff]  ;;  %v566_v31 = vld [vmem:[#allocation10 + $0x198] sm:$0xff] }
  0xd1   :  { %1028 = vmatprep.subr.bf16.mxu0 %v1027_v17  ;;  %v1049_v17 = vpack.c.bf16 %v621_v16, %v619_v15  ;;  %v628_v32 = vld [vmem:[#allocation10 + $0x388] sm:$0xff]  ;;  %v630_v34 = vld [vmem:[#allocation10 + $0x398] sm:$0xff]  ;;  %v563_v35 = vld [vmem:[#allocation10 + $0x180] sm:$0xff] }
  0xd2   :  { %v565_v36 = vld [vmem:[#allocation10 + $0x190] sm:$0xff]  ;;  %v627_v39 = vld [vmem:[#allocation10 + $0x380] sm:$0xff]  ;;  %v570_v43 = vld [vmem:[#allocation10 + $0x1b8] sm:$0xff] }
  0xd3   :  { %966 = vmatpush1.bf16.msra.mxu1 %v965_v18  ;;  %v560_v18 = vld [vmem:[#allocation10 + $0x168] sm:$0xff]  ;;  %v993_v38 = vpack.c.bf16 %v565_v36, %v563_v35  ;;  %v629_v40 = vld [vmem:[#allocation10 + $0x390] sm:$0xff]  ;;  %v634_v46 = vld [vmem:[#allocation10 + $0x3b8] sm:$0xff] }
  0xd4   :  { %1030 = vmatpush1.bf16.msra.mxu0 %v1029_v21  ;;  %968 = vmatprep.subr.bf16.mxu1 %v967_v25  ;;  %v987_v21 = vpack.c.bf16 %v562_v19, %v560_v18  ;;  %v1051_v25 = vpack.c.bf16 %v626_v22, %v624_v20  ;;  %v632_v44 = vld [vmem:[#allocation10 + $0x3a8] sm:$0xff]  ;;  %v567_v47 = vld [vmem:[#allocation10 + $0x1a0] sm:$0xff]  ;;  %v569_v48 = vld [vmem:[#allocation10 + $0x1b0] sm:$0xff] }
  0xd5   :  { %1032 = vmatprep.subr.bf16.mxu0 %v1031_v29  ;;  %v1053_v29 = vpack.c.bf16 %v625_v28, %v623_v27  ;;  %v997_v50 = vpack.c.bf16 %v569_v48, %v567_v47  ;;  %v631_v51 = vld [vmem:[#allocation10 + $0x3a0] sm:$0xff]  ;;  %v633_v52 = vld [vmem:[#allocation10 + $0x3b0] sm:$0xff]  ;;  %v574_v55 = vld [vmem:[#allocation10 + $0x1d8] sm:$0xff] }
  0xd6   :  { %v636_v56 = vld [vmem:[#allocation10 + $0x3c8] sm:$0xff]  ;;  %v638_v58 = vld [vmem:[#allocation10 + $0x3d8] sm:$0xff]  ;;  %v571_v59 = vld [vmem:[#allocation10 + $0x1c0] sm:$0xff] }
  0xd7   :  { %970 = vmatpush1.bf16.msra.mxu1 %v969_v30  ;;  %v564_v30 = vld [vmem:[#allocation10 + $0x188] sm:$0xff]  ;;  %v573_v60 = vld [vmem:[#allocation10 + $0x1d0] sm:$0xff]  ;;  %v635_v63 = vld [vmem:[#allocation10 + $0x3c0] sm:$0xff] }
  0xd8   :  { %1034 = vmatpush1.bf16.msra.mxu0 %v1033_v33  ;;  %972 = vmatprep.subr.bf16.mxu1 %v971_v37  ;;  %v991_v33 = vpack.c.bf16 %v566_v31, %v564_v30  ;;  %v1055_v37 = vpack.c.bf16 %v630_v34, %v628_v32  ;;  %v1001_v62 = vpack.c.bf16 %v573_v60, %v571_v59  ;;  %v637_v0 = vld [vmem:[#allocation10 + $0x3d0] sm:$0xff]  ;;  %v578_v3 = vld [vmem:[#allocation10 + $0x1f8] sm:$0xff]  ;;  %v640_v4 = vld [vmem:[#allocation10 + $0x3e8] sm:$0xff] }
  0xd9   :  { %1036 = vmatprep.subr.bf16.mxu0 %v1035_v41  ;;  %v1057_v41 = vpack.c.bf16 %v629_v40, %v627_v39  ;;  %v575_v8 = vld [vmem:[#allocation10 + $0x1e0] sm:$0xff]  ;;  %v641_v12 = vld [vmem:[#allocation10 + $0x3f0] sm:$0xff] }
  0xda   :  { %v639_v10 = vld [vmem:[#allocation10 + $0x3e0] sm:$0xff] }
  0xdb   :  { %974 = vmatpush1.bf16.msra.mxu1 %v973_v42  ;;  %v568_v42 = vld [vmem:[#allocation10 + $0x1a8] sm:$0xff] }
  0xdc   :  { %1038 = vmatpush1.bf16.msra.mxu0 %v1037_v45  ;;  %976 = vmatprep.subr.bf16.mxu1 %v975_v49  ;;  %v995_v45 = vpack.c.bf16 %v570_v43, %v568_v42  ;;  %v1059_v49 = vpack.c.bf16 %v634_v46, %v632_v44 }
  0xdd   :  { %1040 = vmatprep.subr.bf16.mxu0 %v1039_v53  ;;  %v1061_v53 = vpack.c.bf16 %v633_v52, %v631_v51 }
  0xdf   :  { %978 = vmatpush1.bf16.msra.mxu1 %v977_v54  ;;  %v572_v54 = vld [vmem:[#allocation10 + $0x1c8] sm:$0xff] }
  0xe0   :  { %1042 = vmatpush1.bf16.msra.mxu0 %v1041_v57  ;;  %980 = vmatprep.subr.bf16.mxu1 %v979_v61  ;;  %v999_v57 = vpack.c.bf16 %v574_v55, %v572_v54  ;;  %v1063_v61 = vpack.c.bf16 %v638_v58, %v636_v56 }
  0xe1   :  { %1044 = vmatprep.subr.bf16.mxu0 %v1043_v1  ;;  %v576_v1 = vld [vmem:[#allocation10 + $0x1e8] sm:$0xff] }
  0xe2   :  { %v1003_v6 = vpack.c.bf16 %v578_v3, %v576_v1 }
  0xe3   :  { %982 = vmatpush1.bf16.msra.mxu1 %v981_v2  ;;  %v1065_v2 = vpack.c.bf16 %v637_v0, %v635_v63 }
  0xe4   :  { %1046 = vmatpush1.bf16.msra.mxu0 %v1045_v5  ;;  %984 = vmatprep.subr.bf16.mxu1 %v983_v9  ;;  %v642_v5 = vld [vmem:[#allocation10 + $0x3f8] sm:$0xff]  ;;  %v577_v9 = vld [vmem:[#allocation10 + $0x1f0] sm:$0xff] }
  0xe5   :  { %1048 = vmatprep.subr.bf16.mxu0 %v1047_v13  ;;  %v1067_v7 = vpack.c.bf16 %v642_v5, %v640_v4  ;;  %v1005_v11 = vpack.c.bf16 %v577_v9, %v575_v8  ;;  %v1069_v13 = vpack.c.bf16 %v641_v12, %v639_v10 }
  0xe7   :  { %986 = vmatpush1.bf16.msra.mxu1 %v985_v14  ;;  %v195_v14 = vlaneseq }
  0xe8   :  { %1050 = vmatpush1.bf16.msra.mxu0 %v1049_v17  ;;  %988 = vmatprep.subr.bf16.mxu1 %v987_v21  ;;  %v193_v17 = vld [vmem:[#allocation6] sm:$0xf] }
  0xe9   :  { %1052 = vmatprep.subr.bf16.mxu0 %v1051_v25  ;;  %v196_v15 = vshrl.u32 %v195_v14, 7 }
  0xeb   :  { %990 = vmatpush1.bf16.msra.mxu1 %v989_v26  ;;  %v1485_v16 = vsub.s32 0, %v196_v15  ;;  %v1487_v18 = vsub.s32 2, %v196_v15  ;;  %v1489_v19 = vsub.s32 1, %v196_v15  ;;  %v1491_v20 = vsub.s32 3, %v196_v15 }
  0xec   :  { %1054 = vmatpush1.bf16.msra.mxu0 %v1053_v29  ;;  %992 = vmatprep.subr.bf16.mxu1 %v991_v33 }
  0xed   :  { %1056 = vmatprep.subr.bf16.mxu0 %v1055_v37  ;;  %v198_v21 = vrot.slane %v193_v17, %v1485_v16  ;;  %v206_v22 = vrot.slane %v193_v17, %v1487_v18  ;;  %v202_v23 = vrot.slane %v193_v17, %v1489_v19  ;;  %v210_v24 = vrot.slane %v193_v17, %v1491_v20 }
  0xef   :  { %994 = vmatpush1.bf16.msra.mxu1 %v993_v38 }
  0xf0   :  { %1058 = vmatpush1.bf16.msra.mxu0 %v1057_v41  ;;  %996 = vmatprep.subr.bf16.mxu1 %v995_v45 }
  0xf1   :  { %1060 = vmatprep.subr.bf16.mxu0 %v1059_v49 }
  0xf3   :  { %998 = vmatpush1.bf16.msra.mxu1 %v997_v50 }
  0xf4   :  { %1062 = vmatpush1.bf16.msra.mxu0 %v1061_v53  ;;  %1000 = vmatprep.subr.bf16.mxu1 %v999_v57 }
  0xf5   :  { %1064 = vmatprep.subr.bf16.mxu0 %v1063_v61 }
  0xf7   :  { %1002 = vmatpush1.bf16.msra.mxu1 %v1001_v62 }
  0xf8   :  { %1066 = vmatpush1.bf16.msra.mxu0 %v1065_v2  ;;  %1004 = vmatprep.subr.bf16.mxu1 %v1003_v6 }
  0xf9   :  { %1068 = vmatprep.subr.bf16.mxu0 %v1067_v7 }
  0xfb   :  { %1006 = vmatpush1.bf16.msra.mxu1 %v1005_v11 }
  0xfc   :  { %1070 = vmatpush1.bf16.msra.mxu0 %v1069_v13 }
 0x190   :  { %v298_v25 = vpop.f32.mrb[0].mxu0 }
 0x191   :  { %v299_v26 = vadd.f32 %v298_v25, %v198_v21  ;;  %v369_v27 = vpop.f32.mrb[0].mxu1  ;;  %v300_v28 = vpop.f32.mrb[1].mxu0 }
 0x192   :  { %v370_v29 = vadd.f32 %v369_v27, %v206_v22  ;;  %v301_v30 = vadd.f32 %v300_v28, %v202_v23  ;;  %v371_v31 = vpop.f32.mrb[1].mxu1 }
 0x193   :  { %v376_v32 = vrot.slane %v299_v26, 4  ;;  %v372_v33 = vadd.f32 %v371_v31, %v210_v24 }
 0x194   :  { %v388_v34 = vrot.slane %v370_v29, 4  ;;  %v382_v35 = vrot.slane %v301_v30, 4 }
 0x195   :  { %v377_v36 = vadd.f32 %v376_v32, %v299_v26  ;;  %v394_v37 = vrot.slane %v372_v33, 4 }
 0x196   :  { %v389_v38 = vadd.f32 %v388_v34, %v370_v29  ;;  %v383_v39 = vadd.f32 %v382_v35, %v301_v30 }
 0x197   :  { %v378_v40 = vrot.slane %v377_v36, 2  ;;  %v395_v41 = vadd.f32 %v394_v37, %v372_v33 }
 0x198   :  { %v390_v42 = vrot.slane %v389_v38, 2  ;;  %v384_v43 = vrot.slane %v383_v39, 2 }
 0x199   :  { %v379_v44 = vadd.f32 %v378_v40, %v377_v36  ;;  %v396_v45 = vrot.slane %v395_v41, 2 }
 0x19a   :  { %v391_v46 = vadd.f32 %v390_v42, %v389_v38  ;;  %v385_v47 = vadd.f32 %v384_v43, %v383_v39  ;;  %v375_v42 = vld [vmem:[#allocation9] sm:$0xf] }
 0x19b   :  { %v380_v48 = vrot.slane %v379_v44, 1  ;;  %v397_v49 = vadd.f32 %v396_v45, %v395_v41  ;;  %v374_v41 = vld [vmem:[#allocation7] sm:$0xf] }
 0x19c   :  { %v392_v50 = vrot.slane %v391_v46, 1  ;;  %v386_v51 = vrot.slane %v385_v47, 1  ;;  %v457_v43 = vrot.slane %v374_v41, %v1485_v16  ;;  %v465_v45 = vrot.slane %v374_v41, %v1487_v18 }
 0x19d   :  { %v381_v52 = vadd.f32 %v380_v48, %v379_v44  ;;  %v398_v53 = vrot.slane %v397_v49, 1  ;;  %v461_v48 = vrot.slane %v374_v41, %v1489_v19 }
 0x19e   :  { %v393_v54 = vadd.f32 %v392_v50, %v391_v46  ;;  %v387_v55 = vadd.f32 %v386_v51, %v385_v47 }
 0x19f   :  { %v401_v56 = vmul.f32 0.125, %v381_v52  ;;  %v399_v57 = vadd.f32 %v398_v53, %v397_v49  ;;  %v482_v49 = vrot.slane %v375_v42, %v1485_v16  ;;  %v469_v52 = vrot.slane %v374_v41, %v1491_v20 }
 0x1a0   :  { %v403_v58 = vmul.f32 0.125, %v393_v54  ;;  %v402_v59 = vmul.f32 0.125, %v387_v55  ;;  %v490_v53 = vrot.slane %v375_v42, %v1487_v18 }
 0x1a1   :  { %v405_v60 = vsub.f32 %v299_v26, %v401_v56  ;;  %v404_v61 = vmul.f32 0.125, %v399_v57  ;;  %v486_v57 = vrot.slane %v375_v42, %v1489_v19 }
 0x1a2   :  { %v407_v62 = vsub.f32 %v370_v29, %v403_v58  ;;  %v406_v63 = vsub.f32 %v301_v30, %v402_v59 }
 0x1a3   :  { %v409_v0 = vmul.f32 %v405_v60, %v405_v60  ;;  %v408_v1 = vsub.f32 %v372_v33, %v404_v61  ;;  %v494_v61 = vrot.slane %v375_v42, %v1491_v20 }
 0x1a4   :  { %v411_v2 = vmul.f32 %v407_v62, %v407_v62  ;;  %v410_v3 = vmul.f32 %v406_v63, %v406_v63 }
 0x1a5   :  { %v413_v4 = vrot.slane %v409_v0, 4  ;;  %v412_v5 = vmul.f32 %v408_v1, %v408_v1 }
 0x1a6   :  { %v425_v6 = vrot.slane %v411_v2, 4  ;;  %v419_v7 = vrot.slane %v410_v3, 4 }
 0x1a7   :  { %v414_v8 = vadd.f32 %v413_v4, %v409_v0  ;;  %v431_v9 = vrot.slane %v412_v5, 4 }
 0x1a8   :  { %v426_v10 = vadd.f32 %v425_v6, %v411_v2  ;;  %v420_v11 = vadd.f32 %v419_v7, %v410_v3 }
 0x1a9   :  { %v415_v12 = vrot.slane %v414_v8, 2  ;;  %v432_v13 = vadd.f32 %v431_v9, %v412_v5  ;;  %v643_v9 = vld [vmem:[#allocation12] sm:$0x3] }
 0x1aa   :  { %v427_v14 = vrot.slane %v426_v10, 2  ;;  %v421_v15 = vrot.slane %v420_v11, 2 }
 0x1ab   :  { %v416_v17 = vadd.f32 %v415_v12, %v414_v8  ;;  %v433_v21 = vrot.slane %v432_v13, 2 }
 0x1ac   :  { %v428_v22 = vadd.f32 %v427_v14, %v426_v10  ;;  %v422_v23 = vadd.f32 %v421_v15, %v420_v11  ;;  %v648_v10 = vrot.slane %v643_v9, %v1485_v16  ;;  %v652_v11 = vrot.slane %v643_v9, %v1489_v19 }
 0x1ad   :  { %v417_v24 = vrot.slane %v416_v17, 1  ;;  %v434_v25 = vadd.f32 %v433_v21, %v432_v13 }
 0x1ae   :  { %v429_v26 = vrot.slane %v428_v22, 1  ;;  %v423_v27 = vrot.slane %v422_v23, 1 }
 0x1af   :  { %v418_v28 = vadd.f32 %v417_v24, %v416_v17  ;;  %v435_v29 = vrot.slane %v434_v25, 1 }
 0x1b0   :  { %v430_v30 = vadd.f32 %v429_v26, %v428_v22  ;;  %v424_v31 = vadd.f32 %v423_v27, %v422_v23 }
 0x1b1   :  { %v437_v32 = vmul.f32 0.125, %v418_v28  ;;  %v436_v33 = vadd.f32 %v435_v29, %v434_v25 }
 0x1b2   :  { %v439_v34 = vmul.f32 0.125, %v430_v30  ;;  %v438_v35 = vmul.f32 0.125, %v424_v31 }
 0x1b3   :  { %v441_v36 = vadd.f32 1e-05, %v437_v32  ;;  %v440_v37 = vmul.f32 0.125, %v436_v33 }
 0x1b4   :  { %v443_v38 = vadd.f32 1e-05, %v439_v34  ;;  %v442_v39 = vadd.f32 1e-05, %v438_v35 }
 0x1b5   :  { %1089 = vrsqrt.f32 %v441_v36  ;;  %v444_v40 = vadd.f32 1e-05, %v440_v37 }
 0x1b6   :  { %1091 = vrsqrt.f32 %v443_v38 }
 0x1b7   :  { %1093 = vrsqrt.f32 %v442_v39 }
 0x1b8   :  { %1095 = vrsqrt.f32 %v444_v40 }
 0x1bf   :  { %v1090_v44 = vpop.eup %1089 }
 0x1c0   :  { %v1092_v46 = vpop.eup %1091  ;;  %v449_v47 = vmul.f32 %v1090_v44, %v405_v60 }
 0x1c1   :  { %v1094_v50 = vpop.eup %1093  ;;  %v451_v51 = vmul.f32 %v1092_v46, %v407_v62 }
 0x1c2   :  { %v1096_v54 = vpop.eup %1095  ;;  %v474_v55 = vmul.f32 %v457_v43, %v449_v47  ;;  %v450_v56 = vmul.f32 %v1094_v50, %v406_v63 }
 0x1c3   :  { %v476_v58 = vmul.f32 %v465_v45, %v451_v51  ;;  %v452_v59 = vmul.f32 %v1096_v54, %v408_v1 }
 0x1c4   :  { %v475_v60 = vmul.f32 %v461_v48, %v450_v56  ;;  %v499_v0 = vadd.f32 %v482_v49, %v474_v55 }
 0x1c5   :  { %v477_v2 = vmul.f32 %v469_v52, %v452_v59  ;;  %v501_v3 = vadd.f32 %v490_v53, %v476_v58  ;;  %v797_v58 = vld [vmem:[#allocation13] sm:$0x3]  ;;  %v798_v59 = vld [vmem:[#allocation15] sm:$0x3] }
 0x1c6   :  { %v500_v4 = vadd.f32 %v486_v57, %v475_v60  ;;  %v507_v62 = vmul.f32 0.2, %v499_v0  ;;  %vm503_vm3 = vcmp.ge.f32.partialorder %v499_v0, 0.0 }
 0x1c7   :  { %v502_v5 = vadd.f32 %v494_v61, %v477_v2  ;;  %v509_v18 = vmul.f32 0.2, %v501_v3  ;;  %vm505_vm5 = vcmp.ge.f32.partialorder %v501_v3, 0.0  ;;  %v841_v61 = vrot.slane %v797_v58, %v1485_v16 }
 0x1c8   :  { %vm504_vm2 = vcmp.ge.f32.partialorder %v500_v4, 0.0  ;;  %v508_v6 = vmul.f32 0.2, %v500_v4  ;;  %v511_v1 = vsel %vm503_vm3, %v499_v0, %v507_v62  ;;  %v845_v0 = vrot.slane %v797_v58, %v1489_v19 }
 0x1c9   :  { %vm506_vm4 = vcmp.ge.f32.partialorder %v502_v5, 0.0  ;;  %v510_v7 = vmul.f32 0.2, %v502_v5  ;;  %v513_v20 = vsel %vm505_vm5, %v501_v3, %v509_v18  ;;  %v858_v62 = vrot.slane %v798_v59, %v1489_v19 }
 0x1ca   :  { %v512_v63 = vsel %vm504_vm2, %v500_v4, %v508_v6  ;;  %v854_v4 = vrot.slane %v798_v59, %v1485_v16 }
 0x1cb   :  { %719 = vmatprep.mubr.f32.mxu1 %v512_v63  ;;  %v514_v8 = vsel %vm506_vm4, %v502_v5, %v510_v7 }
 0x1cc   :  { %790 = vmatprep.mubr.f32.mxu0 %v514_v8  ;;  %720 = vmatmul.mubr.f32.vlgmr.msra.gmra.mrb[2].mxu1 %v511_v1 }
 0x1cd   :  { %791 = vmatmul.mubr.f32.vlgmr.msra.gmra.mrb[2].mxu0 %v513_v20 }
 0x29f   :  { %v721_v12 = vpop.f32.mrb[2].mxu1 }
 0x2a0   :  { %v722_v13 = vadd.f32 %v721_v12, %v648_v10  ;;  %v792_v14 = vpop.f32.mrb[2].mxu0  ;;  %v723_v15 = vpop.f32.mrb[3].mxu1 }
 0x2a1   :  { %v724_v17 = vadd.f32 %v723_v15, %v652_v11  ;;  %v794_v21 = vpop.f32.mrb[3].mxu0 }
 0x2a2   :  { %v793_v22 = vadd.f32 %v792_v14, %v722_v13 }
 0x2a3   :  { %v795_v23 = vadd.f32 %v794_v21, %v724_v17 }
 0x2a4   :  { %v799_v24 = vrot.slane %v793_v22, 4 }
 0x2a5   :  { %v805_v25 = vrot.slane %v795_v23, 4 }
 0x2a6   :  { %v800_v26 = vadd.f32 %v799_v24, %v793_v22 }
 0x2a7   :  { %v806_v27 = vadd.f32 %v805_v25, %v795_v23 }
 0x2a8   :  { %v801_v28 = vrot.slane %v800_v26, 2 }
 0x2a9   :  { %v807_v29 = vrot.slane %v806_v27, 2 }
 0x2aa   :  { %v802_v30 = vadd.f32 %v801_v28, %v800_v26 }
 0x2ab   :  { %v808_v31 = vadd.f32 %v807_v29, %v806_v27 }
 0x2ac   :  { %v803_v32 = vrot.slane %v802_v30, 1 }
 0x2ad   :  { %v809_v33 = vrot.slane %v808_v31, 1 }
 0x2ae   :  { %v804_v34 = vadd.f32 %v803_v32, %v802_v30 }
 0x2af   :  { %v810_v35 = vadd.f32 %v809_v33, %v808_v31 }
 0x2b0   :  { %v811_v36 = vmul.f32 0.125, %v804_v34 }
 0x2b1   :  { %v812_v37 = vmul.f32 0.125, %v810_v35 }
 0x2b2   :  { %v813_v38 = vsub.f32 %v793_v22, %v811_v36 }
 0x2b3   :  { %v814_v39 = vsub.f32 %v795_v23, %v812_v37 }
 0x2b4   :  { %v815_v40 = vmul.f32 %v813_v38, %v813_v38 }
 0x2b5   :  { %v816_v41 = vmul.f32 %v814_v39, %v814_v39 }
 0x2b6   :  { %v817_v42 = vrot.slane %v815_v40, 4 }
 0x2b7   :  { %v823_v43 = vrot.slane %v816_v41, 4 }
 0x2b8   :  { %v818_v44 = vadd.f32 %v817_v42, %v815_v40 }
 0x2b9   :  { %v824_v45 = vadd.f32 %v823_v43, %v816_v41 }
 0x2ba   :  { %v819_v46 = vrot.slane %v818_v44, 2 }
 0x2bb   :  { %v825_v47 = vrot.slane %v824_v45, 2 }
 0x2bc   :  { %v820_v48 = vadd.f32 %v819_v46, %v818_v44 }
 0x2bd   :  { %v826_v49 = vadd.f32 %v825_v47, %v824_v45 }
 0x2be   :  { %v821_v50 = vrot.slane %v820_v48, 1 }
 0x2bf   :  { %v827_v51 = vrot.slane %v826_v49, 1 }
 0x2c0   :  { %v822_v52 = vadd.f32 %v821_v50, %v820_v48 }
 0x2c1   :  { %v828_v53 = vadd.f32 %v827_v51, %v826_v49 }
 0x2c2   :  { %v829_v54 = vmul.f32 0.125, %v822_v52 }
 0x2c3   :  { %v830_v55 = vmul.f32 0.125, %v828_v53 }
 0x2c4   :  { %v831_v56 = vadd.f32 1e-05, %v829_v54 }
 0x2c5   :  { %v832_v57 = vadd.f32 1e-05, %v830_v55 }
 0x2c6   :  { %1097 = vrsqrt.f32 %v831_v56 }
 0x2c7   :  { %1099 = vrsqrt.f32 %v832_v57 }
 0x2d0   :  { %v1098_v60 = vpop.eup %1097 }
 0x2d1   :  { %v1100_v2 = vpop.eup %1099  ;;  %v835_v3 = vmul.f32 %v1098_v60, %v813_v38 }
 0x2d2   :  { %v836_v5 = vmul.f32 %v1100_v2, %v814_v39 }
 0x2d3   :  { %v848_v6 = vmul.f32 %v841_v61, %v835_v3 }
 0x2d4   :  { %v849_v18 = vmul.f32 %v845_v0, %v836_v5 }
 0x2d5   :  { %v861_v7 = vadd.f32 %v854_v4, %v848_v6 }
 0x2d6   :  { %v862_v63 = vadd.f32 %v858_v62, %v849_v18 }
 0x2d7   :  { %vm863_vm6 = vcmp.ge.f32.partialorder %v861_v7, 0.0  ;;  %v865_v8 = vmul.f32 0.2, %v861_v7 }
 0x2d8   :  { %vm864_vm7 = vcmp.ge.f32.partialorder %v862_v63, 0.0  ;;  %v866_v1 = vmul.f32 0.2, %v862_v63 }
 0x2d9   :  { %v867_v20 = vsel %vm863_vm6, %v861_v7, %v865_v8 }
 0x2da   :  { %v868_v9 = vsel %vm864_vm7, %v862_v63, %v866_v1 }
 0x2db   :  { %v894_v10 = vpack.c.bf16 %v868_v9, %v867_v20 }
 0x2dd   :  { %877 = vst [vmem:[%s1523_s9] sm:$0xff] %v894_v10 }
 0x2de   :  { %882 = vsyncpa [#allocation3], 1 }
 0x2df   :  { %883 = vsyncpa [#allocation5], 1 }
 0x2e0   :  { %884 = vsyncpa [#allocation8], 1 }
 0x2e1   :  { %885 = vsyncpa [#allocation11], 1 }
 0x2e2   :  { %886 = vsyncpa [#allocation14], 1 }

// kernel: _generator_forward.3
= control target key start
LH: loop header
LB: loop body
LE: loop exit
PB: predicated region body
PF: predicated region fallthrough
CT: control target
= control target key end

     0   :  { %8 = vsyncpa [#allocation3], 0  ;;  %s3266_s0 = inlined_call_operand.vmem [shape: bf16[8,256], index: 0, kind: input, shape index: {}]   ;;  %s3267_s1 = inlined_call_operand.hbm [shape: bf16[256,2304], index: 1, kind: input, shape index: {}]   ;;  %s3268_s2 = inlined_call_operand.hbm [shape: f32[1,2304], index: 2, kind: input, shape index: {}]   ;;  %s3269_s3 = inlined_call_operand.vmem [shape: f32[8,2304], index: 3, kind: output, shape index: {}]  }
   0x1   :  { %9 = vsyncpa [#allocation5], 0  ;;  %s3095_s12 = smov [#allocation2]   ;;  %s3047_s16 = scalar_lea.hbm %s3267_s1, 36864 }
   0x2   :  { %s17_s13 = sshll.u32 %s3095_s12, 4  ;;  %p3048_p0 = scmp.ne.s32.totalorder %s3267_s1, %s3047_s16  ;;  %s18_s13 = int_to_ptr.vmem [resolvable:$true] %s17_s13 }
   0x3   :  { %p3051_p1 = scmp.lt.u32.totalorder %s3047_s16, %s3267_s1 }
   0x5   :  { %p3053_p2 = pnand %p3051_p1, %p3048_p0 }
   0x7   :  { %3056 = shalt.err (!%p3053_p2)
}
   0x8   :  { %s3057_s21 = scalar_lea.vmem %s18_s13, 36864  ;;  %p3062_p4 = scmp.lt.s32.totalorder %s18_s13, %s18_s13 }
   0x9   :  { %p3058_p3 = scmp.ne.s32.totalorder %s18_s13, %s3057_s21  ;;  %p3063_p5 = scmp.lt.s32.totalorder %s3057_s21, %s3057_s21 }
   0xb   :  { %p3064_p6 = por %p3063_p5, %p3062_p4 }
   0xd   :  { %p3065_p7 = pnand %p3064_p6, %p3058_p3 }
   0xf   :  { %3068 = shalt.err (!%p3065_p7)
}
  0x10   :  { %s3096_s22 = smov 1152   ;;  %s3097_s23 = smov 72  }
  0x11   :  { %23 = dma.hbm_to_vmem [thread:$0]  %s3267_s1, 36864, %s18_s13, [#allocation3], %s3096_s22, %s3096_s22, %s3097_s23  }
  0x12   :  { %s3098_s26 = smov [#allocation4]   ;;  %s3069_s30 = scalar_lea.hbm %s3268_s2, 288 }
  0x13   :  { %s30_s27 = sshll.u32 %s3098_s26, 4  ;;  %p3070_p8 = scmp.ne.s32.totalorder %s3268_s2, %s3069_s30  ;;  %s31_s27 = int_to_ptr.vmem [resolvable:$true] %s30_s27 }
  0x14   :  { %p3073_p9 = scmp.lt.u32.totalorder %s3069_s30, %s3268_s2 }
  0x16   :  { %p3075_p10 = pnand %p3073_p9, %p3070_p8 }
  0x18   :  { %3078 = shalt.err (!%p3075_p10)
}
  0x19   :  { %s3079_s8 = scalar_lea.vmem %s31_s27, 288  ;;  %p3084_p12 = scmp.lt.s32.totalorder %s31_s27, %s31_s27 }
  0x1a   :  { %p3080_p11 = scmp.ne.s32.totalorder %s31_s27, %s3079_s8  ;;  %p3085_p13 = scmp.lt.s32.totalorder %s3079_s8, %s3079_s8 }
  0x1c   :  { %p3086_p0 = por %p3085_p13, %p3084_p12 }
  0x1e   :  { %p3087_p1 = pnand %p3086_p0, %p3080_p11 }
  0x20   :  { %3090 = shalt.err (!%p3087_p1)
}
  0x21   :  { %33 = dma.hbm_to_vmem [thread:$0]  %s3268_s2, 288, %s31_s27, [#allocation5]  }
  0x22   :  { %3091 = dma.done.wait [#allocation3], 36864  }
  0x23   :  { %3092 = vsyncadd [#allocation3], 4294930432 }
  0x24   :  { %3093 = dma.done.wait [#allocation5], 288  }
  0x25   :  { %3094 = vsyncadd [#allocation5], 4294967008  ;;  %v2577_v0 = vld [vmem:[#allocation2 + $0x4] ss:$72 sps:$4 sm:$0xff]   ;;  %v2579_v1 = vld [vmem:[#allocation2] ss:$72 sps:$4 sm:$0xff]  }
  0x26   :  { %1872 = vmatprep.subr.bf16.mxu0 %v2577_v0  ;;  %v2580_v2 = vld [vmem:[#allocation2 + $0x94] ss:$72 sps:$4 sm:$0xff]   ;;  %v2582_v3 = vld [vmem:[#allocation2 + $0x90] ss:$72 sps:$4 sm:$0xff]   ;;  %v2583_v4 = vld [vmem:[#allocation2 + $0x124] ss:$72 sps:$4 sm:$0xff]  }
  0x27   :  { %1873 = vmatpush1.bf16.msra.mxu0 %v2579_v1  ;;  %v2585_v5 = vld [vmem:[#allocation2 + $0x120] ss:$72 sps:$4 sm:$0xff]   ;;  %v2586_v6 = vld [vmem:[#allocation2 + $0x1b4] ss:$72 sps:$4 sm:$0xff]   ;;  %v2588_v7 = vld [vmem:[#allocation2 + $0x1b0] ss:$72 sps:$4 sm:$0xff]  }
  0x28   :  { %1874 = vmatprep.subr.bf16.mxu0 %v2580_v2  ;;  %v2589_v8 = vld [vmem:[#allocation2 + $0x244] ss:$72 sps:$4 sm:$0xff]   ;;  %v2591_v9 = vld [vmem:[#allocation2 + $0x240] ss:$72 sps:$4 sm:$0xff]   ;;  %v2592_v10 = vld [vmem:[#allocation2 + $0x2d4] ss:$72 sps:$4 sm:$0xff]  }
  0x29   :  { %v2594_v11 = vld [vmem:[#allocation2 + $0x2d0] ss:$72 sps:$4 sm:$0xff]   ;;  %v2595_v12 = vld [vmem:[#allocation2 + $0x364] ss:$72 sps:$4 sm:$0xff]   ;;  %v2597_v16 = vld [vmem:[#allocation2 + $0x360] ss:$72 sps:$4 sm:$0xff]  }
  0x2a   :  { %v2625_v13 = vld [vmem:[#allocation2 + $0xc] ss:$72 sps:$4 sm:$0xff]   ;;  %v2627_v14 = vld [vmem:[#allocation2 + $0x8] ss:$72 sps:$4 sm:$0xff]   ;;  %v3146_v15 = vld [vmem:[%s3266_s0] sm:$0xff] }
  0x2b   :  { %1875 = vmatpush1.bf16.msra.mxu0 %v2582_v3  ;;  %v3150_v17 = vcombine.high %v3146_v15, %v3146_v15  ;;  %v2598_v18 = vld [vmem:[#allocation2 + $0x3f4] ss:$72 sps:$4 sm:$0xff]   ;;  %1913 = vmatprep.subr.bf16.mxu1 %v2625_v13  ;;  %v2635_v20 = vld [vmem:[#allocation2 + $0x98] ss:$72 sps:$4 sm:$0xff]   ;;  %v2601_v23 = vld [vmem:[#allocation2 + $0x484] ss:$72 sps:$4 sm:$0xff]   ;;  %v3156_v57 = vcombine.low %v3146_v15, %v3146_v15 }
  0x2c   :  { %1876 = vmatprep.subr.bf16.mxu0 %v2583_v4  ;;  %1914 = vmatpush1.bf16.msra.mxu1 %v2627_v14  ;;  %v2633_v19 = vld [vmem:[#allocation2 + $0x9c] ss:$72 sps:$4 sm:$0xff]   ;;  %v2600_v21 = vld [vmem:[#allocation2 + $0x3f0] ss:$72 sps:$4 sm:$0xff]   ;;  %v2639_v22 = vld [vmem:[#allocation2 + $0x12c] ss:$72 sps:$4 sm:$0xff]  }
  0x2d   :  { %1904 = vmatprep.mubr.bf16.mxu0 %v3150_v17  ;;  %1945 = vmatprep.mubr.bf16.mxu1 %v3150_v17  ;;  %v2641_v24 = vld [vmem:[#allocation2 + $0x128] ss:$72 sps:$4 sm:$0xff]   ;;  %v2645_v25 = vld [vmem:[#allocation2 + $0x1bc] ss:$72 sps:$4 sm:$0xff]   ;;  %v2647_v28 = vld [vmem:[#allocation2 + $0x1b8] ss:$72 sps:$4 sm:$0xff]  }
  0x2e   :  { %1915 = vmatprep.subr.bf16.mxu1 %v2633_v19  ;;  %v2603_v26 = vld [vmem:[#allocation2 + $0x480] ss:$72 sps:$4 sm:$0xff]   ;;  %v2604_v27 = vld [vmem:[#allocation2 + $0x514] ss:$72 sps:$4 sm:$0xff]   ;;  %v2606_v30 = vld [vmem:[#allocation2 + $0x510] ss:$72 sps:$4 sm:$0xff]  }
  0x2f   :  { %1877 = vmatpush1.bf16.msra.mxu0 %v2585_v5  ;;  %v2651_v29 = vld [vmem:[#allocation2 + $0x24c] ss:$72 sps:$4 sm:$0xff]   ;;  %v2653_v32 = vld [vmem:[#allocation2 + $0x248] ss:$72 sps:$4 sm:$0xff]   ;;  %v2657_v33 = vld [vmem:[#allocation2 + $0x2dc] ss:$72 sps:$4 sm:$0xff]  }
  0x30   :  { %1878 = vmatprep.subr.bf16.mxu0 %v2586_v6  ;;  %1916 = vmatpush1.bf16.msra.mxu1 %v2635_v20  ;;  %v2607_v31 = vld [vmem:[#allocation2 + $0x5a4] ss:$72 sps:$4 sm:$0xff]   ;;  %v2609_v34 = vld [vmem:[#allocation2 + $0x5a0] ss:$72 sps:$4 sm:$0xff]   ;;  %v2610_v35 = vld [vmem:[#allocation2 + $0x634] ss:$72 sps:$4 sm:$0xff]  }
  0x31   :  { %1917 = vmatprep.subr.bf16.mxu1 %v2639_v22  ;;  %v2659_v36 = vld [vmem:[#allocation2 + $0x2d8] ss:$72 sps:$4 sm:$0xff]   ;;  %v2663_v37 = vld [vmem:[#allocation2 + $0x36c] ss:$72 sps:$4 sm:$0xff]   ;;  %v2665_v40 = vld [vmem:[#allocation2 + $0x368] ss:$72 sps:$4 sm:$0xff]  }
  0x32   :  { %v2612_v38 = vld [vmem:[#allocation2 + $0x630] ss:$72 sps:$4 sm:$0xff]   ;;  %v2613_v39 = vld [vmem:[#allocation2 + $0x6c4] ss:$72 sps:$4 sm:$0xff]   ;;  %v2615_v42 = vld [vmem:[#allocation2 + $0x6c0] ss:$72 sps:$4 sm:$0xff]  }
  0x33   :  { %1879 = vmatpush1.bf16.msra.mxu0 %v2588_v7  ;;  %v2669_v41 = vld [vmem:[#allocation2 + $0x3fc] ss:$72 sps:$4 sm:$0xff]   ;;  %v2671_v44 = vld [vmem:[#allocation2 + $0x3f8] ss:$72 sps:$4 sm:$0xff]   ;;  %v2675_v45 = vld [vmem:[#allocation2 + $0x48c] ss:$72 sps:$4 sm:$0xff]  }
  0x34   :  { %1880 = vmatprep.subr.bf16.mxu0 %v2589_v8  ;;  %1918 = vmatpush1.bf16.msra.mxu1 %v2641_v24  ;;  %v2616_v43 = vld [vmem:[#allocation2 + $0x754] ss:$72 sps:$4 sm:$0xff]   ;;  %v2618_v46 = vld [vmem:[#allocation2 + $0x750] ss:$72 sps:$4 sm:$0xff]   ;;  %v2619_v47 = vld [vmem:[#allocation2 + $0x7e4] ss:$72 sps:$4 sm:$0xff]  }
  0x35   :  { %1919 = vmatprep.subr.bf16.mxu1 %v2645_v25  ;;  %v2677_v48 = vld [vmem:[#allocation2 + $0x488] ss:$72 sps:$4 sm:$0xff]   ;;  %v2681_v49 = vld [vmem:[#allocation2 + $0x51c] ss:$72 sps:$4 sm:$0xff]   ;;  %v2683_v52 = vld [vmem:[#allocation2 + $0x518] ss:$72 sps:$4 sm:$0xff]  }
  0x36   :  { %v2621_v50 = vld [vmem:[#allocation2 + $0x7e0] ss:$72 sps:$4 sm:$0xff]   ;;  %v2622_v51 = vld [vmem:[#allocation2 + $0x874] ss:$72 sps:$4 sm:$0xff]   ;;  %v2624_v54 = vld [vmem:[#allocation2 + $0x870] ss:$72 sps:$4 sm:$0xff]  }
  0x37   :  { %1881 = vmatpush1.bf16.msra.mxu0 %v2591_v9  ;;  %v2687_v53 = vld [vmem:[#allocation2 + $0x5ac] ss:$72 sps:$4 sm:$0xff]   ;;  %v2689_v56 = vld [vmem:[#allocation2 + $0x5a8] ss:$72 sps:$4 sm:$0xff]   ;;  %v2693_v58 = vld [vmem:[#allocation2 + $0x63c] ss:$72 sps:$4 sm:$0xff]  }
  0x38   :  { %1882 = vmatprep.subr.bf16.mxu0 %v2592_v10  ;;  %1920 = vmatpush1.bf16.msra.mxu1 %v2647_v28  ;;  %v2632_v55 = vld [vmem:[#allocation2 + $0x14] ss:$72 sps:$4 sm:$0xff]   ;;  %v2630_v59 = vld [vmem:[#allocation2 + $0x10] ss:$72 sps:$4 sm:$0xff]   ;;  %v2638_v60 = vld [vmem:[#allocation2 + $0xa4] ss:$72 sps:$4 sm:$0xff]  }
  0x39   :  { %1921 = vmatprep.subr.bf16.mxu1 %v2651_v29  ;;  %v2695_v61 = vld [vmem:[#allocation2 + $0x638] ss:$72 sps:$4 sm:$0xff]   ;;  %v2699_v62 = vld [vmem:[#allocation2 + $0x6cc] ss:$72 sps:$4 sm:$0xff]   ;;  %v2701_v1 = vld [vmem:[#allocation2 + $0x6c8] ss:$72 sps:$4 sm:$0xff]  }
  0x3a   :  { %v2636_v63 = vld [vmem:[#allocation2 + $0xa0] ss:$72 sps:$4 sm:$0xff]   ;;  %v2644_v0 = vld [vmem:[#allocation2 + $0x134] ss:$72 sps:$4 sm:$0xff]   ;;  %v2642_v3 = vld [vmem:[#allocation2 + $0x130] ss:$72 sps:$4 sm:$0xff]  }
  0x3b   :  { %1883 = vmatpush1.bf16.msra.mxu0 %v2594_v11  ;;  %v2705_v2 = vld [vmem:[#allocation2 + $0x75c] ss:$72 sps:$4 sm:$0xff]   ;;  %v2707_v5 = vld [vmem:[#allocation2 + $0x758] ss:$72 sps:$4 sm:$0xff]   ;;  %v2711_v6 = vld [vmem:[#allocation2 + $0x7ec] ss:$72 sps:$4 sm:$0xff]  }
  0x3c   :  { %1884 = vmatprep.subr.bf16.mxu0 %v2595_v12  ;;  %1922 = vmatpush1.bf16.msra.mxu1 %v2653_v32  ;;  %v2650_v4 = vld [vmem:[#allocation2 + $0x1c4] ss:$72 sps:$4 sm:$0xff]   ;;  %v2648_v7 = vld [vmem:[#allocation2 + $0x1c0] ss:$72 sps:$4 sm:$0xff]   ;;  %v2656_v8 = vld [vmem:[#allocation2 + $0x254] ss:$72 sps:$4 sm:$0xff]  }
  0x3d   :  { %1923 = vmatprep.subr.bf16.mxu1 %v2657_v33  ;;  %v2713_v9 = vld [vmem:[#allocation2 + $0x7e8] ss:$72 sps:$4 sm:$0xff]   ;;  %v2717_v10 = vld [vmem:[#allocation2 + $0x87c] ss:$72 sps:$4 sm:$0xff]   ;;  %v2719_v13 = vld [vmem:[#allocation2 + $0x878] ss:$72 sps:$4 sm:$0xff]  }
  0x3e   :  { %v2654_v11 = vld [vmem:[#allocation2 + $0x250] ss:$72 sps:$4 sm:$0xff]   ;;  %v2662_v12 = vld [vmem:[#allocation2 + $0x2e4] ss:$72 sps:$4 sm:$0xff]   ;;  %v2660_v15 = vld [vmem:[#allocation2 + $0x2e0] ss:$72 sps:$4 sm:$0xff]  }
  0x3f   :  { %1885 = vmatpush1.bf16.msra.mxu0 %v2597_v16  ;;  %v2725_v14 = vld [vmem:[#allocation2 + $0x1c] ss:$72 sps:$4 sm:$0xff]   ;;  %v2731_v19 = vld [vmem:[#allocation2 + $0xac] ss:$72 sps:$4 sm:$0xff]   ;;  %v2666_v20 = vld [vmem:[#allocation2 + $0x370] ss:$72 sps:$4 sm:$0xff]  }
  0x40   :  { %1886 = vmatprep.subr.bf16.mxu0 %v2598_v18  ;;  %1924 = vmatpush1.bf16.msra.mxu1 %v2659_v36  ;;  %v2668_v16 = vld [vmem:[#allocation2 + $0x374] ss:$72 sps:$4 sm:$0xff]   ;;  %v2723_v18 = vld [vmem:[#allocation2 + $0x18] ss:$72 sps:$4 sm:$0xff]   ;;  %v2729_v22 = vld [vmem:[#allocation2 + $0xa8] ss:$72 sps:$4 sm:$0xff]  }
  0x41   :  { %1925 = vmatprep.subr.bf16.mxu1 %v2663_v37  ;;  %v2672_v24 = vld [vmem:[#allocation2 + $0x400] ss:$72 sps:$4 sm:$0xff]   ;;  %v2680_v25 = vld [vmem:[#allocation2 + $0x494] ss:$72 sps:$4 sm:$0xff]   ;;  %v2678_v28 = vld [vmem:[#allocation2 + $0x490] ss:$72 sps:$4 sm:$0xff]  }
  0x42   :  { %v2686_v29 = vld [vmem:[#allocation2 + $0x524] ss:$72 sps:$4 sm:$0xff]   ;;  %v2684_v32 = vld [vmem:[#allocation2 + $0x520] ss:$72 sps:$4 sm:$0xff]   ;;  %v2692_v33 = vld [vmem:[#allocation2 + $0x5b4] ss:$72 sps:$4 sm:$0xff]  }
  0x43   :  { %1887 = vmatpush1.bf16.msra.mxu0 %v2600_v21  ;;  %v2674_v21 = vld [vmem:[#allocation2 + $0x404] ss:$72 sps:$4 sm:$0xff]   ;;  %v2690_v36 = vld [vmem:[#allocation2 + $0x5b0] ss:$72 sps:$4 sm:$0xff]  }
  0x44   :  { %1888 = vmatprep.subr.bf16.mxu0 %v2601_v23  ;;  %1926 = vmatpush1.bf16.msra.mxu1 %v2665_v40  ;;  %v2737_v23 = vld [vmem:[#allocation2 + $0x13c] ss:$72 sps:$4 sm:$0xff]   ;;  %v2696_v40 = vld [vmem:[#allocation2 + $0x640] ss:$72 sps:$4 sm:$0xff]  }
  0x45   :  { %1927 = vmatprep.subr.bf16.mxu1 %v2669_v41  ;;  %v2698_v37 = vld [vmem:[#allocation2 + $0x644] ss:$72 sps:$4 sm:$0xff]   ;;  %v2704_v41 = vld [vmem:[#allocation2 + $0x6d4] ss:$72 sps:$4 sm:$0xff]  }
  0x47   :  { %1889 = vmatpush1.bf16.msra.mxu0 %v2603_v26  ;;  %v2735_v26 = vld [vmem:[#allocation2 + $0x138] ss:$72 sps:$4 sm:$0xff]  }
  0x48   :  { %1890 = vmatprep.subr.bf16.mxu0 %v2604_v27  ;;  %1928 = vmatpush1.bf16.msra.mxu1 %v2671_v44  ;;  %v2743_v27 = vld [vmem:[#allocation2 + $0x1cc] ss:$72 sps:$4 sm:$0xff]   ;;  %v2702_v44 = vld [vmem:[#allocation2 + $0x6d0] ss:$72 sps:$4 sm:$0xff]  }
  0x49   :  { %1929 = vmatprep.subr.bf16.mxu1 %v2675_v45  ;;  %v2710_v45 = vld [vmem:[#allocation2 + $0x764] ss:$72 sps:$4 sm:$0xff]  }
  0x4b   :  { %1891 = vmatpush1.bf16.msra.mxu0 %v2606_v30  ;;  %v2741_v30 = vld [vmem:[#allocation2 + $0x1c8] ss:$72 sps:$4 sm:$0xff]  }
  0x4c   :  { %1892 = vmatprep.subr.bf16.mxu0 %v2607_v31  ;;  %1930 = vmatpush1.bf16.msra.mxu1 %v2677_v48  ;;  %v2749_v31 = vld [vmem:[#allocation2 + $0x25c] ss:$72 sps:$4 sm:$0xff]   ;;  %v2708_v48 = vld [vmem:[#allocation2 + $0x760] ss:$72 sps:$4 sm:$0xff]  }
  0x4d   :  { %1931 = vmatprep.subr.bf16.mxu1 %v2681_v49  ;;  %v2716_v49 = vld [vmem:[#allocation2 + $0x7f4] ss:$72 sps:$4 sm:$0xff]  }
  0x4f   :  { %1893 = vmatpush1.bf16.msra.mxu0 %v2609_v34  ;;  %v2747_v34 = vld [vmem:[#allocation2 + $0x258] ss:$72 sps:$4 sm:$0xff]  }
  0x50   :  { %1894 = vmatprep.subr.bf16.mxu0 %v2610_v35  ;;  %1932 = vmatpush1.bf16.msra.mxu1 %v2683_v52  ;;  %v2755_v35 = vld [vmem:[#allocation2 + $0x2ec] ss:$72 sps:$4 sm:$0xff]   ;;  %v2714_v52 = vld [vmem:[#allocation2 + $0x7f0] ss:$72 sps:$4 sm:$0xff]  }
  0x51   :  { %1933 = vmatprep.subr.bf16.mxu1 %v2687_v53  ;;  %v2722_v53 = vld [vmem:[#allocation2 + $0x884] ss:$72 sps:$4 sm:$0xff]  }
  0x53   :  { %1895 = vmatpush1.bf16.msra.mxu0 %v2612_v38  ;;  %v2753_v38 = vld [vmem:[#allocation2 + $0x2e8] ss:$72 sps:$4 sm:$0xff]  }
  0x54   :  { %1896 = vmatprep.subr.bf16.mxu0 %v2613_v39  ;;  %1934 = vmatpush1.bf16.msra.mxu1 %v2689_v56  ;;  %v2761_v39 = vld [vmem:[#allocation2 + $0x37c] ss:$72 sps:$4 sm:$0xff]   ;;  %v2720_v56 = vld [vmem:[#allocation2 + $0x880] ss:$72 sps:$4 sm:$0xff]  }
  0x55   :  { %1935 = vmatprep.subr.bf16.mxu1 %v2693_v58  ;;  %v2728_v58 = vld [vmem:[#allocation2 + $0x24] ss:$72 sps:$4 sm:$0xff]  }
  0x57   :  { %1897 = vmatpush1.bf16.msra.mxu0 %v2615_v42  ;;  %v2759_v42 = vld [vmem:[#allocation2 + $0x378] ss:$72 sps:$4 sm:$0xff]  }
  0x58   :  { %1898 = vmatprep.subr.bf16.mxu0 %v2616_v43  ;;  %1936 = vmatpush1.bf16.msra.mxu1 %v2695_v61  ;;  %v2767_v43 = vld [vmem:[#allocation2 + $0x40c] ss:$72 sps:$4 sm:$0xff]   ;;  %v2726_v61 = vld [vmem:[#allocation2 + $0x20] ss:$72 sps:$4 sm:$0xff]  }
  0x59   :  { %1937 = vmatprep.subr.bf16.mxu1 %v2699_v62  ;;  %v2734_v62 = vld [vmem:[#allocation2 + $0xb4] ss:$72 sps:$4 sm:$0xff]  }
  0x5b   :  { %1899 = vmatpush1.bf16.msra.mxu0 %v2618_v46  ;;  %v2765_v46 = vld [vmem:[#allocation2 + $0x408] ss:$72 sps:$4 sm:$0xff]  }
  0x5c   :  { %1900 = vmatprep.subr.bf16.mxu0 %v2619_v47  ;;  %1938 = vmatpush1.bf16.msra.mxu1 %v2701_v1  ;;  %v2773_v47 = vld [vmem:[#allocation2 + $0x49c] ss:$72 sps:$4 sm:$0xff]   ;;  %v2732_v1 = vld [vmem:[#allocation2 + $0xb0] ss:$72 sps:$4 sm:$0xff]  }
  0x5d   :  { %1939 = vmatprep.subr.bf16.mxu1 %v2705_v2  ;;  %v2740_v2 = vld [vmem:[#allocation2 + $0x144] ss:$72 sps:$4 sm:$0xff]  }
  0x5f   :  { %1901 = vmatpush1.bf16.msra.mxu0 %v2621_v50  ;;  %v2771_v50 = vld [vmem:[#allocation2 + $0x498] ss:$72 sps:$4 sm:$0xff]  }
  0x60   :  { %1902 = vmatprep.subr.bf16.mxu0 %v2622_v51  ;;  %1940 = vmatpush1.bf16.msra.mxu1 %v2707_v5  ;;  %v2779_v51 = vld [vmem:[#allocation2 + $0x52c] ss:$72 sps:$4 sm:$0xff]   ;;  %v2738_v5 = vld [vmem:[#allocation2 + $0x140] ss:$72 sps:$4 sm:$0xff]  }
  0x61   :  { %1941 = vmatprep.subr.bf16.mxu1 %v2711_v6  ;;  %v2746_v6 = vld [vmem:[#allocation2 + $0x1d4] ss:$72 sps:$4 sm:$0xff]  }
  0x63   :  { %1903 = vmatpush1.bf16.msra.mxu0 %v2624_v54  ;;  %v2777_v54 = vld [vmem:[#allocation2 + $0x528] ss:$72 sps:$4 sm:$0xff]  }
  0x64   :  { %1954 = vmatprep.subr.bf16.mxu0 %v2632_v55  ;;  %1942 = vmatpush1.bf16.msra.mxu1 %v2713_v9  ;;  %v2785_v55 = vld [vmem:[#allocation2 + $0x5bc] ss:$72 sps:$4 sm:$0xff]   ;;  %v2744_v9 = vld [vmem:[#allocation2 + $0x1d0] ss:$72 sps:$4 sm:$0xff]  }
  0x65   :  { %1943 = vmatprep.subr.bf16.mxu1 %v2717_v10  ;;  %v2752_v10 = vld [vmem:[#allocation2 + $0x264] ss:$72 sps:$4 sm:$0xff]  }
  0x66   :  { %1905 = vmatmul.mubr.bf16.vlgmr.msra.gmra.mrb[0].mxu0 %v3156_v57 }
  0x67   :  { %1955 = vmatpush1.bf16.msra.mxu0 %v2630_v59  ;;  %1986 = vmatprep.mubr.bf16.mxu0 %v3150_v17  ;;  %v2783_v59 = vld [vmem:[#allocation2 + $0x5b8] ss:$72 sps:$4 sm:$0xff]  }
  0x68   :  { %1956 = vmatprep.subr.bf16.mxu0 %v2638_v60  ;;  %1944 = vmatpush1.bf16.msra.mxu1 %v2719_v13  ;;  %v2791_v60 = vld [vmem:[#allocation2 + $0x64c] ss:$72 sps:$4 sm:$0xff]   ;;  %v2750_v13 = vld [vmem:[#allocation2 + $0x260] ss:$72 sps:$4 sm:$0xff]  }
  0x69   :  { %1995 = vmatprep.subr.bf16.mxu1 %v2725_v14  ;;  %v2758_v14 = vld [vmem:[#allocation2 + $0x2f4] ss:$72 sps:$4 sm:$0xff]  }
  0x6b   :  { %1957 = vmatpush1.bf16.msra.mxu0 %v2636_v63  ;;  %1946 = vmatmul.mubr.bf16.vlgmr.msra.gmra.mrb[0].mxu1 %v3156_v57  ;;  %v2789_v63 = vld [vmem:[#allocation2 + $0x648] ss:$72 sps:$4 sm:$0xff]  }
  0x6c   :  { %1958 = vmatprep.subr.bf16.mxu0 %v2644_v0  ;;  %1996 = vmatpush1.bf16.msra.mxu1 %v2723_v18  ;;  %v2797_v0 = vld [vmem:[#allocation2 + $0x6dc] ss:$72 sps:$4 sm:$0xff]   ;;  %v2756_v18 = vld [vmem:[#allocation2 + $0x2f0] ss:$72 sps:$4 sm:$0xff]  }
  0x6d   :  { %2027 = vmatprep.mubr.bf16.mxu1 %v3150_v17  ;;  %1997 = vmatprep.subr.bf16.mxu1 %v2731_v19  ;;  %v2764_v19 = vld [vmem:[#allocation2 + $0x384] ss:$72 sps:$4 sm:$0xff]  }
  0x6f   :  { %1959 = vmatpush1.bf16.msra.mxu0 %v2642_v3  ;;  %v2795_v3 = vld [vmem:[#allocation2 + $0x6d8] ss:$72 sps:$4 sm:$0xff]  }
  0x70   :  { %1960 = vmatprep.subr.bf16.mxu0 %v2650_v4  ;;  %1998 = vmatpush1.bf16.msra.mxu1 %v2729_v22  ;;  %v2803_v4 = vld [vmem:[#allocation2 + $0x76c] ss:$72 sps:$4 sm:$0xff]   ;;  %v2762_v22 = vld [vmem:[#allocation2 + $0x380] ss:$72 sps:$4 sm:$0xff]  }
  0x71   :  { %1999 = vmatprep.subr.bf16.mxu1 %v2737_v23  ;;  %v2770_v23 = vld [vmem:[#allocation2 + $0x414] ss:$72 sps:$4 sm:$0xff]  }
  0x73   :  { %1961 = vmatpush1.bf16.msra.mxu0 %v2648_v7  ;;  %v2801_v7 = vld [vmem:[#allocation2 + $0x768] ss:$72 sps:$4 sm:$0xff]  }
  0x74   :  { %1962 = vmatprep.subr.bf16.mxu0 %v2656_v8  ;;  %2000 = vmatpush1.bf16.msra.mxu1 %v2735_v26  ;;  %v2809_v8 = vld [vmem:[#allocation2 + $0x7fc] ss:$72 sps:$4 sm:$0xff]   ;;  %v2768_v26 = vld [vmem:[#allocation2 + $0x410] ss:$72 sps:$4 sm:$0xff]  }
  0x75   :  { %2001 = vmatprep.subr.bf16.mxu1 %v2743_v27  ;;  %v2776_v27 = vld [vmem:[#allocation2 + $0x4a4] ss:$72 sps:$4 sm:$0xff]  }
  0x77   :  { %1963 = vmatpush1.bf16.msra.mxu0 %v2654_v11  ;;  %v2807_v11 = vld [vmem:[#allocation2 + $0x7f8] ss:$72 sps:$4 sm:$0xff]  }
  0x78   :  { %1964 = vmatprep.subr.bf16.mxu0 %v2662_v12  ;;  %2002 = vmatpush1.bf16.msra.mxu1 %v2741_v30  ;;  %v2815_v12 = vld [vmem:[#allocation2 + $0x88c] ss:$72 sps:$4 sm:$0xff]   ;;  %v2774_v30 = vld [vmem:[#allocation2 + $0x4a0] ss:$72 sps:$4 sm:$0xff]  }
  0x79   :  { %2003 = vmatprep.subr.bf16.mxu1 %v2749_v31  ;;  %v2782_v31 = vld [vmem:[#allocation2 + $0x534] ss:$72 sps:$4 sm:$0xff]  }
  0x7b   :  { %1965 = vmatpush1.bf16.msra.mxu0 %v2660_v15  ;;  %v2813_v15 = vld [vmem:[#allocation2 + $0x888] ss:$72 sps:$4 sm:$0xff]  }
  0x7c   :  { %1966 = vmatprep.subr.bf16.mxu0 %v2668_v16  ;;  %2004 = vmatpush1.bf16.msra.mxu1 %v2747_v34  ;;  %v2821_v16 = vld [vmem:[#allocation2 + $0x2c] ss:$72 sps:$4 sm:$0xff]   ;;  %v2780_v34 = vld [vmem:[#allocation2 + $0x530] ss:$72 sps:$4 sm:$0xff]  }
  0x7d   :  { %2005 = vmatprep.subr.bf16.mxu1 %v2755_v35  ;;  %v2788_v35 = vld [vmem:[#allocation2 + $0x5c4] ss:$72 sps:$4 sm:$0xff]  }
  0x7f   :  { %1967 = vmatpush1.bf16.msra.mxu0 %v2666_v20  ;;  %v2819_v20 = vld [vmem:[#allocation2 + $0x28] ss:$72 sps:$4 sm:$0xff]  }
  0x80   :  { %1968 = vmatprep.subr.bf16.mxu0 %v2674_v21  ;;  %2006 = vmatpush1.bf16.msra.mxu1 %v2753_v38  ;;  %v2827_v21 = vld [vmem:[#allocation2 + $0xbc] ss:$72 sps:$4 sm:$0xff]   ;;  %v2786_v38 = vld [vmem:[#allocation2 + $0x5c0] ss:$72 sps:$4 sm:$0xff]  }
  0x81   :  { %2007 = vmatprep.subr.bf16.mxu1 %v2761_v39  ;;  %v2794_v39 = vld [vmem:[#allocation2 + $0x654] ss:$72 sps:$4 sm:$0xff]  }
  0x83   :  { %1969 = vmatpush1.bf16.msra.mxu0 %v2672_v24  ;;  %v2825_v24 = vld [vmem:[#allocation2 + $0xb8] ss:$72 sps:$4 sm:$0xff]  }
  0x84   :  { %1970 = vmatprep.subr.bf16.mxu0 %v2680_v25  ;;  %2008 = vmatpush1.bf16.msra.mxu1 %v2759_v42  ;;  %v2833_v25 = vld [vmem:[#allocation2 + $0x14c] ss:$72 sps:$4 sm:$0xff]   ;;  %v2792_v42 = vld [vmem:[#allocation2 + $0x650] ss:$72 sps:$4 sm:$0xff]  }
  0x85   :  { %2009 = vmatprep.subr.bf16.mxu1 %v2767_v43  ;;  %v2800_v43 = vld [vmem:[#allocation2 + $0x6e4] ss:$72 sps:$4 sm:$0xff]  }
  0x87   :  { %1971 = vmatpush1.bf16.msra.mxu0 %v2678_v28  ;;  %v2831_v28 = vld [vmem:[#allocation2 + $0x148] ss:$72 sps:$4 sm:$0xff]  }
  0x88   :  { %1972 = vmatprep.subr.bf16.mxu0 %v2686_v29  ;;  %2010 = vmatpush1.bf16.msra.mxu1 %v2765_v46  ;;  %v2839_v29 = vld [vmem:[#allocation2 + $0x1dc] ss:$72 sps:$4 sm:$0xff]   ;;  %v2798_v46 = vld [vmem:[#allocation2 + $0x6e0] ss:$72 sps:$4 sm:$0xff]  }
  0x89   :  { %2011 = vmatprep.subr.bf16.mxu1 %v2773_v47  ;;  %v2806_v47 = vld [vmem:[#allocation2 + $0x774] ss:$72 sps:$4 sm:$0xff]  }
  0x8b   :  { %1973 = vmatpush1.bf16.msra.mxu0 %v2684_v32  ;;  %v2837_v32 = vld [vmem:[#allocation2 + $0x1d8] ss:$72 sps:$4 sm:$0xff]  }
  0x8c   :  { %1974 = vmatprep.subr.bf16.mxu0 %v2692_v33  ;;  %2012 = vmatpush1.bf16.msra.mxu1 %v2771_v50  ;;  %v2845_v33 = vld [vmem:[#allocation2 + $0x26c] ss:$72 sps:$4 sm:$0xff]   ;;  %v2804_v50 = vld [vmem:[#allocation2 + $0x770] ss:$72 sps:$4 sm:$0xff]  }
  0x8d   :  { %2013 = vmatprep.subr.bf16.mxu1 %v2779_v51  ;;  %v2812_v51 = vld [vmem:[#allocation2 + $0x804] ss:$72 sps:$4 sm:$0xff]  }
  0x8f   :  { %1975 = vmatpush1.bf16.msra.mxu0 %v2690_v36  ;;  %v2843_v36 = vld [vmem:[#allocation2 + $0x268] ss:$72 sps:$4 sm:$0xff]  }
  0x90   :  { %1976 = vmatprep.subr.bf16.mxu0 %v2698_v37  ;;  %2014 = vmatpush1.bf16.msra.mxu1 %v2777_v54  ;;  %v2851_v37 = vld [vmem:[#allocation2 + $0x2fc] ss:$72 sps:$4 sm:$0xff]   ;;  %v2810_v54 = vld [vmem:[#allocation2 + $0x800] ss:$72 sps:$4 sm:$0xff]  }
  0x91   :  { %2015 = vmatprep.subr.bf16.mxu1 %v2785_v55  ;;  %v2818_v55 = vld [vmem:[#allocation2 + $0x894] ss:$72 sps:$4 sm:$0xff]  }
  0x93   :  { %1977 = vmatpush1.bf16.msra.mxu0 %v2696_v40  ;;  %v2849_v40 = vld [vmem:[#allocation2 + $0x2f8] ss:$72 sps:$4 sm:$0xff]  }
  0x94   :  { %1978 = vmatprep.subr.bf16.mxu0 %v2704_v41  ;;  %2016 = vmatpush1.bf16.msra.mxu1 %v2783_v59  ;;  %v2857_v41 = vld [vmem:[#allocation2 + $0x38c] ss:$72 sps:$4 sm:$0xff]   ;;  %v2816_v59 = vld [vmem:[#allocation2 + $0x890] ss:$72 sps:$4 sm:$0xff]  }
  0x95   :  { %2017 = vmatprep.subr.bf16.mxu1 %v2791_v60  ;;  %v2824_v60 = vld [vmem:[#allocation2 + $0x34] ss:$72 sps:$4 sm:$0xff]  }
  0x97   :  { %1979 = vmatpush1.bf16.msra.mxu0 %v2702_v44  ;;  %v2855_v44 = vld [vmem:[#allocation2 + $0x388] ss:$72 sps:$4 sm:$0xff]  }
  0x98   :  { %1980 = vmatprep.subr.bf16.mxu0 %v2710_v45  ;;  %2018 = vmatpush1.bf16.msra.mxu1 %v2789_v63  ;;  %v2863_v45 = vld [vmem:[#allocation2 + $0x41c] ss:$72 sps:$4 sm:$0xff]   ;;  %v2822_v63 = vld [vmem:[#allocation2 + $0x30] ss:$72 sps:$4 sm:$0xff]  }
  0x99   :  { %2019 = vmatprep.subr.bf16.mxu1 %v2797_v0  ;;  %v2830_v0 = vld [vmem:[#allocation2 + $0xc4] ss:$72 sps:$4 sm:$0xff]  }
  0x9b   :  { %1981 = vmatpush1.bf16.msra.mxu0 %v2708_v48  ;;  %v2861_v48 = vld [vmem:[#allocation2 + $0x418] ss:$72 sps:$4 sm:$0xff]  }
  0x9c   :  { %1982 = vmatprep.subr.bf16.mxu0 %v2716_v49  ;;  %2020 = vmatpush1.bf16.msra.mxu1 %v2795_v3  ;;  %v2869_v49 = vld [vmem:[#allocation2 + $0x4ac] ss:$72 sps:$4 sm:$0xff]   ;;  %v2828_v3 = vld [vmem:[#allocation2 + $0xc0] ss:$72 sps:$4 sm:$0xff]  }
  0x9d   :  { %2021 = vmatprep.subr.bf16.mxu1 %v2803_v4  ;;  %v2836_v4 = vld [vmem:[#allocation2 + $0x154] ss:$72 sps:$4 sm:$0xff]  }
  0x9f   :  { %1983 = vmatpush1.bf16.msra.mxu0 %v2714_v52  ;;  %v2867_v52 = vld [vmem:[#allocation2 + $0x4a8] ss:$72 sps:$4 sm:$0xff]  }
  0xa0   :  { %1984 = vmatprep.subr.bf16.mxu0 %v2722_v53  ;;  %2022 = vmatpush1.bf16.msra.mxu1 %v2801_v7  ;;  %v2875_v53 = vld [vmem:[#allocation2 + $0x53c] ss:$72 sps:$4 sm:$0xff]   ;;  %v2834_v7 = vld [vmem:[#allocation2 + $0x150] ss:$72 sps:$4 sm:$0xff]  }
  0xa1   :  { %2023 = vmatprep.subr.bf16.mxu1 %v2809_v8  ;;  %v2842_v8 = vld [vmem:[#allocation2 + $0x1e4] ss:$72 sps:$4 sm:$0xff]  }
  0xa3   :  { %1985 = vmatpush1.bf16.msra.mxu0 %v2720_v56  ;;  %v2873_v56 = vld [vmem:[#allocation2 + $0x538] ss:$72 sps:$4 sm:$0xff]  }
  0xa4   :  { %2036 = vmatprep.subr.bf16.mxu0 %v2728_v58  ;;  %2024 = vmatpush1.bf16.msra.mxu1 %v2807_v11  ;;  %v2881_v58 = vld [vmem:[#allocation2 + $0x5cc] ss:$72 sps:$4 sm:$0xff]   ;;  %v2840_v11 = vld [vmem:[#allocation2 + $0x1e0] ss:$72 sps:$4 sm:$0xff]  }
  0xa5   :  { %2025 = vmatprep.subr.bf16.mxu1 %v2815_v12  ;;  %v2848_v12 = vld [vmem:[#allocation2 + $0x274] ss:$72 sps:$4 sm:$0xff]  }
  0xa6   :  { %1987 = vmatmul.mubr.bf16.vlgmr.msra.gmra.mrb[4].mxu0 %v3156_v57 }
  0xa7   :  { %2037 = vmatpush1.bf16.msra.mxu0 %v2726_v61  ;;  %2068 = vmatprep.mubr.bf16.mxu0 %v3150_v17  ;;  %v2879_v61 = vld [vmem:[#allocation2 + $0x5c8] ss:$72 sps:$4 sm:$0xff]  }
  0xa8   :  { %2038 = vmatprep.subr.bf16.mxu0 %v2734_v62  ;;  %2026 = vmatpush1.bf16.msra.mxu1 %v2813_v15  ;;  %v2887_v62 = vld [vmem:[#allocation2 + $0x65c] ss:$72 sps:$4 sm:$0xff]   ;;  %v2846_v15 = vld [vmem:[#allocation2 + $0x270] ss:$72 sps:$4 sm:$0xff]  }
  0xa9   :  { %2077 = vmatprep.subr.bf16.mxu1 %v2821_v16  ;;  %v2854_v16 = vld [vmem:[#allocation2 + $0x304] ss:$72 sps:$4 sm:$0xff]  }
  0xab   :  { %2039 = vmatpush1.bf16.msra.mxu0 %v2732_v1  ;;  %2028 = vmatmul.mubr.bf16.vlgmr.msra.gmra.mrb[4].mxu1 %v3156_v57  ;;  %v2885_v1 = vld [vmem:[#allocation2 + $0x658] ss:$72 sps:$4 sm:$0xff]  }
  0xac   :  { %2040 = vmatprep.subr.bf16.mxu0 %v2740_v2  ;;  %2078 = vmatpush1.bf16.msra.mxu1 %v2819_v20  ;;  %v2893_v2 = vld [vmem:[#allocation2 + $0x6ec] ss:$72 sps:$4 sm:$0xff]   ;;  %v2852_v20 = vld [vmem:[#allocation2 + $0x300] ss:$72 sps:$4 sm:$0xff]  }
  0xad   :  { %2109 = vmatprep.mubr.bf16.mxu1 %v3150_v17  ;;  %2079 = vmatprep.subr.bf16.mxu1 %v2827_v21  ;;  %v2860_v21 = vld [vmem:[#allocation2 + $0x394] ss:$72 sps:$4 sm:$0xff]  }
  0xaf   :  { %2041 = vmatpush1.bf16.msra.mxu0 %v2738_v5  ;;  %v2891_v5 = vld [vmem:[#allocation2 + $0x6e8] ss:$72 sps:$4 sm:$0xff]  }
  0xb0   :  { %2042 = vmatprep.subr.bf16.mxu0 %v2746_v6  ;;  %2080 = vmatpush1.bf16.msra.mxu1 %v2825_v24  ;;  %v2899_v6 = vld [vmem:[#allocation2 + $0x77c] ss:$72 sps:$4 sm:$0xff]   ;;  %v2858_v24 = vld [vmem:[#allocation2 + $0x390] ss:$72 sps:$4 sm:$0xff]  }
  0xb1   :  { %2081 = vmatprep.subr.bf16.mxu1 %v2833_v25  ;;  %v2866_v25 = vld [vmem:[#allocation2 + $0x424] ss:$72 sps:$4 sm:$0xff]  }
  0xb3   :  { %2043 = vmatpush1.bf16.msra.mxu0 %v2744_v9  ;;  %v2897_v9 = vld [vmem:[#allocation2 + $0x778] ss:$72 sps:$4 sm:$0xff]  }
  0xb4   :  { %2044 = vmatprep.subr.bf16.mxu0 %v2752_v10  ;;  %2082 = vmatpush1.bf16.msra.mxu1 %v2831_v28  ;;  %v2905_v10 = vld [vmem:[#allocation2 + $0x80c] ss:$72 sps:$4 sm:$0xff]   ;;  %v2864_v28 = vld [vmem:[#allocation2 + $0x420] ss:$72 sps:$4 sm:$0xff]  }
  0xb5   :  { %2083 = vmatprep.subr.bf16.mxu1 %v2839_v29  ;;  %v2872_v29 = vld [vmem:[#allocation2 + $0x4b4] ss:$72 sps:$4 sm:$0xff]  }
  0xb7   :  { %2045 = vmatpush1.bf16.msra.mxu0 %v2750_v13  ;;  %v2903_v13 = vld [vmem:[#allocation2 + $0x808] ss:$72 sps:$4 sm:$0xff]  }
  0xb8   :  { %2046 = vmatprep.subr.bf16.mxu0 %v2758_v14  ;;  %2084 = vmatpush1.bf16.msra.mxu1 %v2837_v32  ;;  %v2911_v14 = vld [vmem:[#allocation2 + $0x89c] ss:$72 sps:$4 sm:$0xff]   ;;  %v2870_v32 = vld [vmem:[#allocation2 + $0x4b0] ss:$72 sps:$4 sm:$0xff]  }
  0xb9   :  { %2085 = vmatprep.subr.bf16.mxu1 %v2845_v33  ;;  %v2878_v33 = vld [vmem:[#allocation2 + $0x544] ss:$72 sps:$4 sm:$0xff]  }
  0xbb   :  { %2047 = vmatpush1.bf16.msra.mxu0 %v2756_v18  ;;  %v2909_v18 = vld [vmem:[#allocation2 + $0x898] ss:$72 sps:$4 sm:$0xff]  }
  0xbc   :  { %2048 = vmatprep.subr.bf16.mxu0 %v2764_v19  ;;  %2086 = vmatpush1.bf16.msra.mxu1 %v2843_v36  ;;  %v2917_v19 = vld [vmem:[#allocation2 + $0x3c] ss:$72 sps:$4 sm:$0xff]   ;;  %v2876_v36 = vld [vmem:[#allocation2 + $0x540] ss:$72 sps:$4 sm:$0xff]  }
  0xbd   :  { %2087 = vmatprep.subr.bf16.mxu1 %v2851_v37  ;;  %v2884_v37 = vld [vmem:[#allocation2 + $0x5d4] ss:$72 sps:$4 sm:$0xff]  }
  0xbf   :  { %2049 = vmatpush1.bf16.msra.mxu0 %v2762_v22  ;;  %v2915_v22 = vld [vmem:[#allocation2 + $0x38] ss:$72 sps:$4 sm:$0xff]  }
  0xc0   :  { %2050 = vmatprep.subr.bf16.mxu0 %v2770_v23  ;;  %2088 = vmatpush1.bf16.msra.mxu1 %v2849_v40  ;;  %v2923_v23 = vld [vmem:[#allocation2 + $0xcc] ss:$72 sps:$4 sm:$0xff]   ;;  %v2882_v40 = vld [vmem:[#allocation2 + $0x5d0] ss:$72 sps:$4 sm:$0xff]  }
  0xc1   :  { %2089 = vmatprep.subr.bf16.mxu1 %v2857_v41  ;;  %v2890_v41 = vld [vmem:[#allocation2 + $0x664] ss:$72 sps:$4 sm:$0xff]  }
  0xc3   :  { %2051 = vmatpush1.bf16.msra.mxu0 %v2768_v26  ;;  %v2921_v26 = vld [vmem:[#allocation2 + $0xc8] ss:$72 sps:$4 sm:$0xff]  }
  0xc4   :  { %2052 = vmatprep.subr.bf16.mxu0 %v2776_v27  ;;  %2090 = vmatpush1.bf16.msra.mxu1 %v2855_v44  ;;  %v2929_v27 = vld [vmem:[#allocation2 + $0x15c] ss:$72 sps:$4 sm:$0xff]   ;;  %v2888_v44 = vld [vmem:[#allocation2 + $0x660] ss:$72 sps:$4 sm:$0xff]  }
  0xc5   :  { %2091 = vmatprep.subr.bf16.mxu1 %v2863_v45  ;;  %v2896_v45 = vld [vmem:[#allocation2 + $0x6f4] ss:$72 sps:$4 sm:$0xff]  }
  0xc7   :  { %2053 = vmatpush1.bf16.msra.mxu0 %v2774_v30  ;;  %v2927_v30 = vld [vmem:[#allocation2 + $0x158] ss:$72 sps:$4 sm:$0xff]  }
  0xc8   :  { %2054 = vmatprep.subr.bf16.mxu0 %v2782_v31  ;;  %2092 = vmatpush1.bf16.msra.mxu1 %v2861_v48  ;;  %v2935_v31 = vld [vmem:[#allocation2 + $0x1ec] ss:$72 sps:$4 sm:$0xff]   ;;  %v2894_v48 = vld [vmem:[#allocation2 + $0x6f0] ss:$72 sps:$4 sm:$0xff]  }
  0xc9   :  { %2093 = vmatprep.subr.bf16.mxu1 %v2869_v49  ;;  %v2902_v49 = vld [vmem:[#allocation2 + $0x784] ss:$72 sps:$4 sm:$0xff]  }
  0xcb   :  { %2055 = vmatpush1.bf16.msra.mxu0 %v2780_v34  ;;  %v2933_v34 = vld [vmem:[#allocation2 + $0x1e8] ss:$72 sps:$4 sm:$0xff]  }
  0xcc   :  { %2056 = vmatprep.subr.bf16.mxu0 %v2788_v35  ;;  %2094 = vmatpush1.bf16.msra.mxu1 %v2867_v52  ;;  %v2941_v35 = vld [vmem:[#allocation2 + $0x27c] ss:$72 sps:$4 sm:$0xff]   ;;  %v2900_v52 = vld [vmem:[#allocation2 + $0x780] ss:$72 sps:$4 sm:$0xff]  }
  0xcd   :  { %2095 = vmatprep.subr.bf16.mxu1 %v2875_v53  ;;  %v2908_v53 = vld [vmem:[#allocation2 + $0x814] ss:$72 sps:$4 sm:$0xff]  }
  0xcf   :  { %2057 = vmatpush1.bf16.msra.mxu0 %v2786_v38  ;;  %v2939_v38 = vld [vmem:[#allocation2 + $0x278] ss:$72 sps:$4 sm:$0xff]  }
  0xd0   :  { %2058 = vmatprep.subr.bf16.mxu0 %v2794_v39  ;;  %2096 = vmatpush1.bf16.msra.mxu1 %v2873_v56  ;;  %v2947_v39 = vld [vmem:[#allocation2 + $0x30c] ss:$72 sps:$4 sm:$0xff]   ;;  %v2906_v56 = vld [vmem:[#allocation2 + $0x810] ss:$72 sps:$4 sm:$0xff]  }
  0xd1   :  { %2097 = vmatprep.subr.bf16.mxu1 %v2881_v58  ;;  %v2914_v58 = vld [vmem:[#allocation2 + $0x8a4] ss:$72 sps:$4 sm:$0xff]  }
  0xd3   :  { %2059 = vmatpush1.bf16.msra.mxu0 %v2792_v42  ;;  %v2945_v42 = vld [vmem:[#allocation2 + $0x308] ss:$72 sps:$4 sm:$0xff]  }
  0xd4   :  { %2060 = vmatprep.subr.bf16.mxu0 %v2800_v43  ;;  %2098 = vmatpush1.bf16.msra.mxu1 %v2879_v61  ;;  %v2953_v43 = vld [vmem:[#allocation2 + $0x39c] ss:$72 sps:$4 sm:$0xff]   ;;  %v2912_v61 = vld [vmem:[#allocation2 + $0x8a0] ss:$72 sps:$4 sm:$0xff]  }
  0xd5   :  { %2099 = vmatprep.subr.bf16.mxu1 %v2887_v62  ;;  %v2920_v62 = vld [vmem:[#allocation2 + $0x44] ss:$72 sps:$4 sm:$0xff]  }
  0xd7   :  { %2061 = vmatpush1.bf16.msra.mxu0 %v2798_v46  ;;  %v2951_v46 = vld [vmem:[#allocation2 + $0x398] ss:$72 sps:$4 sm:$0xff]  }
  0xd8   :  { %2062 = vmatprep.subr.bf16.mxu0 %v2806_v47  ;;  %2100 = vmatpush1.bf16.msra.mxu1 %v2885_v1  ;;  %v2959_v47 = vld [vmem:[#allocation2 + $0x42c] ss:$72 sps:$4 sm:$0xff]   ;;  %v2918_v1 = vld [vmem:[#allocation2 + $0x40] ss:$72 sps:$4 sm:$0xff]  }
  0xd9   :  { %2101 = vmatprep.subr.bf16.mxu1 %v2893_v2  ;;  %v2926_v2 = vld [vmem:[#allocation2 + $0xd4] ss:$72 sps:$4 sm:$0xff]  }
  0xdb   :  { %2063 = vmatpush1.bf16.msra.mxu0 %v2804_v50  ;;  %v2957_v50 = vld [vmem:[#allocation2 + $0x428] ss:$72 sps:$4 sm:$0xff]  }
  0xdc   :  { %2064 = vmatprep.subr.bf16.mxu0 %v2812_v51  ;;  %2102 = vmatpush1.bf16.msra.mxu1 %v2891_v5  ;;  %v2965_v51 = vld [vmem:[#allocation2 + $0x4bc] ss:$72 sps:$4 sm:$0xff]   ;;  %v2924_v5 = vld [vmem:[#allocation2 + $0xd0] ss:$72 sps:$4 sm:$0xff]  }
  0xdd   :  { %2103 = vmatprep.subr.bf16.mxu1 %v2899_v6  ;;  %v2932_v6 = vld [vmem:[#allocation2 + $0x164] ss:$72 sps:$4 sm:$0xff]  }
  0xdf   :  { %2065 = vmatpush1.bf16.msra.mxu0 %v2810_v54  ;;  %v2963_v54 = vld [vmem:[#allocation2 + $0x4b8] ss:$72 sps:$4 sm:$0xff]  }
  0xe0   :  { %2066 = vmatprep.subr.bf16.mxu0 %v2818_v55  ;;  %2104 = vmatpush1.bf16.msra.mxu1 %v2897_v9  ;;  %v2971_v55 = vld [vmem:[#allocation2 + $0x54c] ss:$72 sps:$4 sm:$0xff]  }
  0xe1   :  { %2105 = vmatprep.subr.bf16.mxu1 %v2905_v10  ;;  %v2995_v9 = vld [vmem:[#allocation2 + $0x78c] ss:$72 sps:$4 sm:$0xff]   ;;  %v2930_v10 = vld [vmem:[#allocation2 + $0x160] ss:$72 sps:$4 sm:$0xff]  }
  0xe3   :  { %2067 = vmatpush1.bf16.msra.mxu0 %v2816_v59  ;;  %v2969_v59 = vld [vmem:[#allocation2 + $0x548] ss:$72 sps:$4 sm:$0xff]  }
  0xe4   :  { %2118 = vmatprep.subr.bf16.mxu0 %v2824_v60  ;;  %2106 = vmatpush1.bf16.msra.mxu1 %v2903_v13  ;;  %v2977_v60 = vld [vmem:[#allocation2 + $0x5dc] ss:$72 sps:$4 sm:$0xff]  }
  0xe5   :  { %2107 = vmatprep.subr.bf16.mxu1 %v2911_v14  ;;  %v3001_v14 = vld [vmem:[#allocation2 + $0x81c] ss:$72 sps:$4 sm:$0xff]  }
  0xe6   :  { %2069 = vmatmul.mubr.bf16.vlgmr.msra.gmra.mrb[8].mxu0 %v3156_v57 }
  0xe7   :  { %2119 = vmatpush1.bf16.msra.mxu0 %v2822_v63  ;;  %2150 = vmatprep.mubr.bf16.mxu0 %v3150_v17  ;;  %v2975_v63 = vld [vmem:[#allocation2 + $0x5d8] ss:$72 sps:$4 sm:$0xff]  }
  0xe8   :  { %2120 = vmatprep.subr.bf16.mxu0 %v2830_v0  ;;  %2108 = vmatpush1.bf16.msra.mxu1 %v2909_v18  ;;  %v2983_v0 = vld [vmem:[#allocation2 + $0x66c] ss:$72 sps:$4 sm:$0xff]  }
  0xe9   :  { %2159 = vmatprep.subr.bf16.mxu1 %v2917_v19  ;;  %v3007_v19 = vld [vmem:[#allocation2 + $0x8ac] ss:$72 sps:$4 sm:$0xff]  }
  0xeb   :  { %2121 = vmatpush1.bf16.msra.mxu0 %v2828_v3  ;;  %2110 = vmatmul.mubr.bf16.vlgmr.msra.gmra.mrb[8].mxu1 %v3156_v57  ;;  %v2981_v3 = vld [vmem:[#allocation2 + $0x668] ss:$72 sps:$4 sm:$0xff]  }
  0xec   :  { %2122 = vmatprep.subr.bf16.mxu0 %v2836_v4  ;;  %2160 = vmatpush1.bf16.msra.mxu1 %v2915_v22  ;;  %v2989_v4 = vld [vmem:[#allocation2 + $0x6fc] ss:$72 sps:$4 sm:$0xff]  }
  0xed   :  { %2191 = vmatprep.mubr.bf16.mxu1 %v3150_v17  ;;  %2161 = vmatprep.subr.bf16.mxu1 %v2923_v23  ;;  %v2950_v23 = vld [vmem:[#allocation2 + $0x314] ss:$72 sps:$4 sm:$0xff]  }
  0xef   :  { %2123 = vmatpush1.bf16.msra.mxu0 %v2834_v7  ;;  %v2987_v7 = vld [vmem:[#allocation2 + $0x6f8] ss:$72 sps:$4 sm:$0xff]  }
  0xf0   :  { %2124 = vmatprep.subr.bf16.mxu0 %v2842_v8  ;;  %2162 = vmatpush1.bf16.msra.mxu1 %v2921_v26  ;;  %v335_v8 = vlaneseq }
  0xf1   :  { %2163 = vmatprep.subr.bf16.mxu1 %v2929_v27  ;;  %v2948_v27 = vld [vmem:[#allocation2 + $0x310] ss:$72 sps:$4 sm:$0xff]  }
  0xf2   :  { %v3172_v13 = vshrl.u32 %v335_v8, 7 }
  0xf3   :  { %2125 = vmatpush1.bf16.msra.mxu0 %v2840_v11  ;;  %v2938_v11 = vld [vmem:[#allocation2 + $0x1f4] ss:$72 sps:$4 sm:$0xff]  }
  0xf4   :  { %2126 = vmatprep.subr.bf16.mxu0 %v2848_v12  ;;  %2164 = vmatpush1.bf16.msra.mxu1 %v2927_v30  ;;  %v2993_v12 = vld [vmem:[#allocation2 + $0x788] ss:$72 sps:$4 sm:$0xff]   ;;  %v3175_v18 = vsub.s32 0, %v3172_v13  ;;  %v3180_v22 = vsub.s32 1, %v3172_v13 }
  0xf5   :  { %2165 = vmatprep.subr.bf16.mxu1 %v2935_v31 }
  0xf7   :  { %2127 = vmatpush1.bf16.msra.mxu0 %v2846_v15  ;;  %v2936_v15 = vld [vmem:[#allocation2 + $0x1f0] ss:$72 sps:$4 sm:$0xff]  }
  0xf8   :  { %2128 = vmatprep.subr.bf16.mxu0 %v2854_v16  ;;  %2166 = vmatpush1.bf16.msra.mxu1 %v2933_v34  ;;  %v2999_v16 = vld [vmem:[#allocation2 + $0x818] ss:$72 sps:$4 sm:$0xff]  }
  0xf9   :  { %2167 = vmatprep.subr.bf16.mxu1 %v2941_v35  ;;  %v2954_v34 = vld [vmem:[#allocation2 + $0x3a0] ss:$72 sps:$4 sm:$0xff]  }
  0xfb   :  { %2129 = vmatpush1.bf16.msra.mxu0 %v2852_v20  ;;  %v2942_v20 = vld [vmem:[#allocation2 + $0x280] ss:$72 sps:$4 sm:$0xff]  }
  0xfc   :  { %2130 = vmatprep.subr.bf16.mxu0 %v2860_v21  ;;  %2168 = vmatpush1.bf16.msra.mxu1 %v2939_v38  ;;  %v3177_v21 = vld [vmem:[#allocation4] sm:$0xff] }
  0xfd   :  { %2169 = vmatprep.subr.bf16.mxu1 %v2947_v39  ;;  %v342_v26 = vrot.slane %v3177_v21, %v3180_v22  ;;  %v2968_v38 = vld [vmem:[#allocation2 + $0x4c4] ss:$72 sps:$4 sm:$0xff]   ;;  %v2966_v39 = vld [vmem:[#allocation2 + $0x4c0] ss:$72 sps:$4 sm:$0xff]  }
  0xff   :  { %2131 = vmatpush1.bf16.msra.mxu0 %v2858_v24  ;;  %v3005_v24 = vld [vmem:[#allocation2 + $0x8a8] ss:$72 sps:$4 sm:$0xff]  }
 0x100   :  { %2132 = vmatprep.subr.bf16.mxu0 %v2866_v25  ;;  %2170 = vmatpush1.bf16.msra.mxu1 %v2945_v42  ;;  %v338_v25 = vrot.slane %v3177_v21, %v3175_v18 }
 0x101   :  { %2171 = vmatprep.subr.bf16.mxu1 %v2953_v43  ;;  %v2972_v43 = vld [vmem:[#allocation2 + $0x550] ss:$72 sps:$4 sm:$0xff]  }
 0x103   :  { %2133 = vmatpush1.bf16.msra.mxu0 %v2864_v28  ;;  %v2956_v28 = vld [vmem:[#allocation2 + $0x3a4] ss:$72 sps:$4 sm:$0xff]  }
 0x104   :  { %2134 = vmatprep.subr.bf16.mxu0 %v2872_v29  ;;  %2172 = vmatpush1.bf16.msra.mxu1 %v2951_v46  ;;  %v349_v46 = vsub.s32 3, %v3172_v13 }
 0x105   :  { %2173 = vmatprep.subr.bf16.mxu1 %v2959_v47  ;;  %v2978_v47 = vld [vmem:[#allocation2 + $0x5e0] ss:$72 sps:$4 sm:$0xff]  }
 0x107   :  { %2135 = vmatpush1.bf16.msra.mxu0 %v2870_v32 }
 0x108   :  { %2136 = vmatprep.subr.bf16.mxu0 %v2878_v33  ;;  %2174 = vmatpush1.bf16.msra.mxu1 %v2957_v50  ;;  %v350_v50 = vrot.slane %v3177_v21, %v349_v46 }
 0x109   :  { %2175 = vmatprep.subr.bf16.mxu1 %v2965_v51  ;;  %v2984_v51 = vld [vmem:[#allocation2 + $0x670] ss:$72 sps:$4 sm:$0xff]  }
 0x10b   :  { %2137 = vmatpush1.bf16.msra.mxu0 %v2876_v36  ;;  %v2962_v36 = vld [vmem:[#allocation2 + $0x434] ss:$72 sps:$4 sm:$0xff]  }
 0x10c   :  { %2138 = vmatprep.subr.bf16.mxu0 %v2884_v37  ;;  %2176 = vmatpush1.bf16.msra.mxu1 %v2963_v54  ;;  %v2960_v37 = vld [vmem:[#allocation2 + $0x430] ss:$72 sps:$4 sm:$0xff]  }
 0x10d   :  { %2177 = vmatprep.subr.bf16.mxu1 %v2971_v55 }
 0x10f   :  { %2139 = vmatpush1.bf16.msra.mxu0 %v2882_v40  ;;  %v2974_v40 = vld [vmem:[#allocation2 + $0x554] ss:$72 sps:$4 sm:$0xff]  }
 0x110   :  { %2140 = vmatprep.subr.bf16.mxu0 %v2890_v41  ;;  %2178 = vmatpush1.bf16.msra.mxu1 %v2969_v59 }
 0x111   :  { %2179 = vmatprep.subr.bf16.mxu1 %v2977_v60  ;;  %v2990_v60 = vld [vmem:[#allocation2 + $0x700] ss:$72 sps:$4 sm:$0xff]  }
 0x113   :  { %2141 = vmatpush1.bf16.msra.mxu0 %v2888_v44  ;;  %v2980_v44 = vld [vmem:[#allocation2 + $0x5e4] ss:$72 sps:$4 sm:$0xff]  }
 0x114   :  { %2142 = vmatprep.subr.bf16.mxu0 %v2896_v45  ;;  %2180 = vmatpush1.bf16.msra.mxu1 %v2975_v63  ;;  %v345_v45 = vsub.s32 2, %v3172_v13  ;;  %v3004_v63 = vld [vmem:[#allocation2 + $0x824] ss:$72 sps:$4 sm:$0xff]  }
 0x115   :  { %2181 = vmatprep.subr.bf16.mxu1 %v2983_v0  ;;  %v3002_v0 = vld [vmem:[#allocation2 + $0x820] ss:$72 sps:$4 sm:$0xff]  }
 0x117   :  { %2143 = vmatpush1.bf16.msra.mxu0 %v2894_v48  ;;  %v2986_v48 = vld [vmem:[#allocation2 + $0x674] ss:$72 sps:$4 sm:$0xff]  }
 0x118   :  { %2144 = vmatprep.subr.bf16.mxu0 %v2902_v49  ;;  %2182 = vmatpush1.bf16.msra.mxu1 %v2981_v3  ;;  %v346_v49 = vrot.slane %v3177_v21, %v345_v45 }
 0x119   :  { %2183 = vmatprep.subr.bf16.mxu1 %v2989_v4  ;;  %v3008_v4 = vld [vmem:[#allocation2 + $0x8b0] ss:$72 sps:$4 sm:$0xff]  }
 0x11b   :  { %2145 = vmatpush1.bf16.msra.mxu0 %v2900_v52 }
 0x11c   :  { %2146 = vmatprep.subr.bf16.mxu0 %v2908_v53  ;;  %2184 = vmatpush1.bf16.msra.mxu1 %v2987_v7  ;;  %v2992_v53 = vld [vmem:[#allocation2 + $0x704] ss:$72 sps:$4 sm:$0xff]  }
 0x11d   :  { %2185 = vmatprep.subr.bf16.mxu1 %v2995_v9 }
 0x11f   :  { %2147 = vmatpush1.bf16.msra.mxu0 %v2906_v56 }
 0x120   :  { %2148 = vmatprep.subr.bf16.mxu0 %v2914_v58  ;;  %2186 = vmatpush1.bf16.msra.mxu1 %v2993_v12 }
 0x121   :  { %2187 = vmatprep.subr.bf16.mxu1 %v3001_v14 }
 0x123   :  { %2149 = vmatpush1.bf16.msra.mxu0 %v2912_v61  ;;  %v2998_v61 = vld [vmem:[#allocation2 + $0x794] ss:$72 sps:$4 sm:$0xff]  }
 0x124   :  { %2200 = vmatprep.subr.bf16.mxu0 %v2920_v62  ;;  %2188 = vmatpush1.bf16.msra.mxu1 %v2999_v16  ;;  %v2996_v62 = vld [vmem:[#allocation2 + $0x790] ss:$72 sps:$4 sm:$0xff]  }
 0x125   :  { %2189 = vmatprep.subr.bf16.mxu1 %v3007_v19  ;;  %v365_v19 = vsub.s32 7, %v3172_v13 }
 0x126   :  { %2151 = vmatmul.mubr.bf16.vlgmr.msra.gmra.mrb[12].mxu0 %v3156_v57 }
 0x127   :  { %2201 = vmatpush1.bf16.msra.mxu0 %v2918_v1  ;;  %2232 = vmatprep.mubr.bf16.mxu0 %v3150_v17  ;;  %v2944_v17 = vld [vmem:[#allocation2 + $0x284] ss:$72 sps:$4 sm:$0xff]  }
 0x128   :  { %2202 = vmatprep.subr.bf16.mxu0 %v2926_v2  ;;  %2190 = vmatpush1.bf16.msra.mxu1 %v3005_v24  ;;  %v3010_v2 = vld [vmem:[#allocation2 + $0x8b4] ss:$72 sps:$4 sm:$0xff]  }
 0x12b   :  { %2203 = vmatpush1.bf16.msra.mxu0 %v2924_v5  ;;  %2192 = vmatmul.mubr.bf16.vlgmr.msra.gmra.mrb[12].mxu1 %v3156_v57  ;;  %v353_v5 = vsub.s32 4, %v3172_v13 }
 0x12c   :  { %2204 = vmatprep.subr.bf16.mxu0 %v2932_v6  ;;  %v357_v6 = vsub.s32 5, %v3172_v13 }
 0x12d   :  { %v354_v7 = vrot.slane %v3177_v21, %v353_v5 }
 0x12e   :  { %v358_v8 = vrot.slane %v3177_v21, %v357_v6 }
 0x12f   :  { %2205 = vmatpush1.bf16.msra.mxu0 %v2930_v10 }
 0x130   :  { %2206 = vmatprep.subr.bf16.mxu0 %v2938_v11 }
 0x133   :  { %2207 = vmatpush1.bf16.msra.mxu0 %v2936_v15 }
 0x134   :  { %2208 = vmatprep.subr.bf16.mxu0 %v2944_v17 }
 0x137   :  { %2209 = vmatpush1.bf16.msra.mxu0 %v2942_v20 }
 0x138   :  { %2210 = vmatprep.subr.bf16.mxu0 %v2950_v23  ;;  %v366_v23 = vrot.slane %v3177_v21, %v365_v19 }
 0x139   :  { %v1906_v29 = vpop.f32.mrb[0].mxu0 }
 0x13a   :  { %v1907_v30 = vadd.f32 %v1906_v29, %v338_v25  ;;  %v1908_v31 = vpop.f32.mrb[1].mxu0 }
 0x13b   :  { %v1909_v32 = vadd.f32 %v1908_v31, %v342_v26  ;;  %v1910_v33 = vpop.f32.mrb[2].mxu0  ;;  %2211 = vmatpush1.bf16.msra.mxu0 %v2948_v27 }
 0x13c   :  { %3011 = vtanh.f32 %v1907_v30  ;;  %v1911_v35 = vpop.f32.mrb[3].mxu0  ;;  %2212 = vmatprep.subr.bf16.mxu0 %v2956_v28 }
 0x13d   :  { %3013 = vtanh.f32 %v1909_v32  ;;  %v330_v32 = vld [vmem:[#allocation4 + $0x8] sm:$0xff] }
 0x13e   :  { %v1947_v52 = vpop.f32.mrb[0].mxu1  ;;  %v374_v33 = vrot.slane %v330_v32, %v3180_v22 }
 0x13f   :  { %2213 = vmatpush1.bf16.msra.mxu0 %v2954_v34  ;;  %v1948_v54 = vadd.f32 %v1947_v52, %v346_v49  ;;  %v1949_v55 = vpop.f32.mrb[1].mxu1 }
 0x140   :  { %2214 = vmatprep.subr.bf16.mxu0 %v2962_v36  ;;  %v1950_v56 = vadd.f32 %v1949_v55, %v350_v50  ;;  %v1951_v58 = vpop.f32.mrb[2].mxu1 }
 0x141   :  { %3015 = vtanh.f32 %v1948_v54  ;;  %v1952_v59 = vpop.f32.mrb[3].mxu1 }
 0x142   :  { %3017 = vtanh.f32 %v1950_v56 }
 0x143   :  { %2215 = vmatpush1.bf16.msra.mxu0 %v2960_v37 }
 0x144   :  { %2216 = vmatprep.subr.bf16.mxu0 %v2968_v38 }
 0x146   :  { %v3012_v41 = vpop.eup %3011 }
 0x147   :  { %v3014_v42 = vpop.eup %3013  ;;  %2259 = vst [vmem:[%s3269_s3] sm:$0xff] %v3012_v41  ;;  %2217 = vmatpush1.bf16.msra.mxu0 %v2966_v39 }
 0x148   :  { %2260 = vst [vmem:[%s3269_s3 + $0x8] sm:$0xff] %v3014_v42  ;;  %2218 = vmatprep.subr.bf16.mxu0 %v2974_v40  ;;  %v378_v42 = vrot.slane %v330_v32, %v345_v45  ;;  %v390_v45 = vrot.slane %v330_v32, %v357_v6 }
 0x14b   :  { %2219 = vmatpush1.bf16.msra.mxu0 %v2972_v43  ;;  %v3016_v1 = vpop.eup %3015  ;;  %v382_v43 = vrot.slane %v330_v32, %v349_v46 }
 0x14c   :  { %2220 = vmatprep.subr.bf16.mxu0 %v2980_v44  ;;  %v3018_v3 = vpop.eup %3017  ;;  %2261 = vst [vmem:[%s3269_s3 + $0x10] sm:$0xff] %v3016_v1 }
 0x14d   :  { %2262 = vst [vmem:[%s3269_s3 + $0x18] sm:$0xff] %v3018_v3 }
 0x14f   :  { %2221 = vmatpush1.bf16.msra.mxu0 %v2978_v47 }
 0x150   :  { %2222 = vmatprep.subr.bf16.mxu0 %v2986_v48 }
 0x153   :  { %2223 = vmatpush1.bf16.msra.mxu0 %v2984_v51 }
 0x154   :  { %2224 = vmatprep.subr.bf16.mxu0 %v2992_v53 }
 0x157   :  { %2225 = vmatpush1.bf16.msra.mxu0 %v2990_v60 }
 0x158   :  { %2226 = vmatprep.subr.bf16.mxu0 %v2998_v61 }
 0x15b   :  { %2227 = vmatpush1.bf16.msra.mxu0 %v2996_v62 }
 0x15c   :  { %2228 = vmatprep.subr.bf16.mxu0 %v3004_v63  ;;  %v398_v63 = vrot.slane %v330_v32, %v365_v19 }
 0x15f   :  { %2229 = vmatpush1.bf16.msra.mxu0 %v3002_v0 }
 0x160   :  { %2230 = vmatprep.subr.bf16.mxu0 %v3010_v2 }
 0x163   :  { %2231 = vmatpush1.bf16.msra.mxu0 %v3008_v4 }
 0x166   :  { %2233 = vmatmul.mubr.bf16.vlgmr.msra.gmra.mrb[16].mxu0 %v3156_v57  ;;  %v361_v57 = vsub.s32 6, %v3172_v13  ;;  %v386_v13 = vrot.slane %v330_v32, %v353_v5 }
 0x168   :  { %v362_v20 = vrot.slane %v3177_v21, %v361_v57  ;;  %v370_v21 = vrot.slane %v330_v32, %v3175_v18  ;;  %v394_v62 = vrot.slane %v330_v32, %v361_v57 }
 0x179   :  { %v1988_v9 = vpop.f32.mrb[4].mxu0 }
 0x17a   :  { %v1989_v10 = vadd.f32 %v1988_v9, %v354_v7  ;;  %v1990_v11 = vpop.f32.mrb[5].mxu0 }
 0x17b   :  { %v1991_v12 = vadd.f32 %v1990_v11, %v358_v8  ;;  %v1992_v14 = vpop.f32.mrb[6].mxu0  ;;  %v331_v8 = vld [vmem:[#allocation4 + $0x10] sm:$0x3] }
 0x17c   :  { %3019 = vtanh.f32 %v1989_v10  ;;  %v1993_v15 = vpop.f32.mrb[7].mxu0  ;;  %v402_v9 = vrot.slane %v331_v8, %v3175_v18  ;;  %v406_v10 = vrot.slane %v331_v8, %v3180_v22 }
 0x17d   :  { %3021 = vtanh.f32 %v1991_v12 }
 0x17e   :  { %v2029_v24 = vpop.f32.mrb[4].mxu1 }
 0x17f   :  { %v2030_v25 = vadd.f32 %v2029_v24, %v362_v20  ;;  %v2031_v26 = vpop.f32.mrb[5].mxu1 }
 0x180   :  { %v2032_v27 = vadd.f32 %v2031_v26, %v366_v23  ;;  %v2033_v28 = vpop.f32.mrb[6].mxu1 }
 0x181   :  { %3023 = vtanh.f32 %v2030_v25  ;;  %v2034_v29 = vpop.f32.mrb[7].mxu1 }
 0x182   :  { %3025 = vtanh.f32 %v2032_v27 }
 0x186   :  { %v3020_v17 = vpop.eup %3019 }
 0x187   :  { %v3022_v16 = vpop.eup %3021  ;;  %2263 = vst [vmem:[%s3269_s3 + $0x20] sm:$0xff] %v3020_v17 }
 0x188   :  { %2264 = vst [vmem:[%s3269_s3 + $0x28] sm:$0xff] %v3022_v16 }
 0x18b   :  { %v3024_v30 = vpop.eup %3023 }
 0x18c   :  { %v3026_v31 = vpop.eup %3025  ;;  %2265 = vst [vmem:[%s3269_s3 + $0x30] sm:$0xff] %v3024_v30 }
 0x18d   :  { %2266 = vst [vmem:[%s3269_s3 + $0x38] sm:$0xff] %v3026_v31 }
 0x1b9   :  { %v2070_v34 = vpop.f32.mrb[8].mxu0 }
 0x1ba   :  { %v2071_v35 = vadd.f32 %v2070_v34, %v370_v21  ;;  %v2072_v36 = vpop.f32.mrb[9].mxu0 }
 0x1bb   :  { %v2073_v37 = vadd.f32 %v2072_v36, %v374_v33  ;;  %v2074_v38 = vpop.f32.mrb[10].mxu0 }
 0x1bc   :  { %3027 = vtanh.f32 %v2071_v35  ;;  %v2075_v39 = vpop.f32.mrb[11].mxu0 }
 0x1bd   :  { %3029 = vtanh.f32 %v2073_v37 }
 0x1be   :  { %v2111_v44 = vpop.f32.mrb[8].mxu1 }
 0x1bf   :  { %v2112_v47 = vadd.f32 %v2111_v44, %v378_v42  ;;  %v2113_v48 = vpop.f32.mrb[9].mxu1 }
 0x1c0   :  { %v2114_v49 = vadd.f32 %v2113_v48, %v382_v43  ;;  %v2115_v50 = vpop.f32.mrb[10].mxu1 }
 0x1c1   :  { %3031 = vtanh.f32 %v2112_v47  ;;  %v2116_v51 = vpop.f32.mrb[11].mxu1 }
 0x1c2   :  { %3033 = vtanh.f32 %v2114_v49 }
 0x1c6   :  { %v3028_v40 = vpop.eup %3027 }
 0x1c7   :  { %v3030_v41 = vpop.eup %3029  ;;  %2267 = vst [vmem:[%s3269_s3 + $0x40] sm:$0xff] %v3028_v40 }
 0x1c8   :  { %2268 = vst [vmem:[%s3269_s3 + $0x48] sm:$0xff] %v3030_v41 }
 0x1cb   :  { %v3032_v52 = vpop.eup %3031 }
 0x1cc   :  { %v3034_v53 = vpop.eup %3033  ;;  %2269 = vst [vmem:[%s3269_s3 + $0x50] sm:$0xff] %v3032_v52 }
 0x1cd   :  { %2270 = vst [vmem:[%s3269_s3 + $0x58] sm:$0xff] %v3034_v53 }
 0x1f9   :  { %v2152_v46 = vpop.f32.mrb[12].mxu0 }
 0x1fa   :  { %v2153_v54 = vadd.f32 %v2152_v46, %v386_v13  ;;  %v2154_v55 = vpop.f32.mrb[13].mxu0 }
 0x1fb   :  { %v2155_v56 = vadd.f32 %v2154_v55, %v390_v45  ;;  %v2156_v58 = vpop.f32.mrb[14].mxu0 }
 0x1fc   :  { %3035 = vtanh.f32 %v2153_v54  ;;  %v2157_v59 = vpop.f32.mrb[15].mxu0 }
 0x1fd   :  { %3037 = vtanh.f32 %v2155_v56 }
 0x1fe   :  { %v2193_v0 = vpop.f32.mrb[12].mxu1 }
 0x1ff   :  { %v2194_v1 = vadd.f32 %v2193_v0, %v394_v62  ;;  %v2195_v2 = vpop.f32.mrb[13].mxu1 }
 0x200   :  { %v2196_v3 = vadd.f32 %v2195_v2, %v398_v63  ;;  %v2197_v4 = vpop.f32.mrb[14].mxu1 }
 0x201   :  { %3039 = vtanh.f32 %v2194_v1  ;;  %v2198_v5 = vpop.f32.mrb[15].mxu1 }
 0x202   :  { %3041 = vtanh.f32 %v2196_v3 }
 0x206   :  { %v3036_v60 = vpop.eup %3035 }
 0x207   :  { %v3038_v61 = vpop.eup %3037  ;;  %2271 = vst [vmem:[%s3269_s3 + $0x60] sm:$0xff] %v3036_v60 }
 0x208   :  { %2272 = vst [vmem:[%s3269_s3 + $0x68] sm:$0xff] %v3038_v61 }
 0x20b   :  { %v3040_v6 = vpop.eup %3039 }
 0x20c   :  { %v3042_v7 = vpop.eup %3041  ;;  %2273 = vst [vmem:[%s3269_s3 + $0x70] sm:$0xff] %v3040_v6 }
 0x20d   :  { %2274 = vst [vmem:[%s3269_s3 + $0x78] sm:$0xff] %v3042_v7 }
 0x239   :  { %v2234_v11 = vpop.f32.mrb[16].mxu0 }
 0x23a   :  { %v2235_v12 = vadd.f32 %v2234_v11, %v402_v9  ;;  %v2236_v14 = vpop.f32.mrb[17].mxu0 }
 0x23b   :  { %v2237_v15 = vadd.f32 %v2236_v14, %v406_v10  ;;  %v2238_v17 = vpop.f32.mrb[18].mxu0 }
 0x23c   :  { %3043 = vtanh.f32 %v2235_v12  ;;  %v2239_v16 = vpop.f32.mrb[19].mxu0 }
 0x23d   :  { %3045 = vtanh.f32 %v2237_v15 }
 0x246   :  { %v3044_v57 = vpop.eup %3043 }
 0x247   :  { %v3046_v19 = vpop.eup %3045  ;;  %2275 = vst [vmem:[%s3269_s3 + $0x80] sm:$0xff] %v3044_v57 }
 0x248   :  { %2276 = vst [vmem:[%s3269_s3 + $0x88] sm:$0xff] %v3046_v19 }
 0x249   :  { %2281 = vsyncpa [#allocation3], 1 }
 0x24a   :  { %2282 = vsyncpa [#allocation5], 1 }

</bundles_post_ra>
